<compile_context>
chip_gen: v5e
topology: v5e:2x2
jax: 0.10.0
libtpu: 0.0.40
codegen_flags: <defaults>
</compile_context>

<pallas_src>
import math
from functools import partial

import jax
import jax.numpy as jnp
from jax.experimental import pallas as pl
from jax.experimental.pallas import tpu as pltpu

# --- small, TPU-friendly hyperparameters consistent with the module's structure ---
D_MODEL = 128          # d_model
NHEAD = 4              # nhead -> head_dim = 32
HEAD_DIM = D_MODEL // NHEAD
DIM_FF = 256           # dim_feedforward
EPS = 1e-5             # nn.LayerNorm default eps

B = 2                  # batch
S = 8                  # N + Q  (query + question tokens)
I = 16                 # image patch tokens

MASK_VALUE = -1e30     # additive mask value for cross-batch attention

# Row offsets inside the packed bf16 weight buffers (see qformer_block()).
SA_OW_ROW = 0              # self-attn out-proj   rows [0,   128) of w128
CA_QW_ROW = D_MODEL        # cross-attn Q proj    rows [128, 256) of w128
CA_OW_ROW = 2 * D_MODEL    # cross-attn out-proj  rows [256, 384) of w128
W2_ROW = 3 * D_MODEL       # FFN second linear    rows [384, 640) of w128
CA_KVW_ROW = 0             # cross-attn fused KV  rows [0,   128) of w256
W1_ROW = D_MODEL           # FFN first linear     rows [128, 256) of w256


def _round_up(a, m):
    return (a + m - 1) // m * m


# ------------------------------- the kernel --------------------------------

def qformer_kernel(x_ref, img_ref, w384_ref, w256_ref, w128_ref, vecs_ref, out_ref,
                   *, t_q, t_kv, m_self_row, m_cross_row):
    D, Dh, H, F = D_MODEL, HEAD_DIM, NHEAD, DIM_FF
    f32, bf16 = jnp.float32, jnp.bfloat16

    x = x_ref[...].astype(f32)        # [T, D]   (batch folded into the token dim)
    img = img_ref[...].astype(f32)    # [Ti, D]

    def vrow(r, width):               # static row read from the packed f32 buffer
        return vecs_ref[r:r + 1, 0:width]

    g1, b1 = vrow(0, D), vrow(1, D)
    sa_inb = vrow(2, 3 * D)
    sa_ob = vrow(3, D)
    g2, b2 = vrow(4, D), vrow(5, D)
    ca_qb = vrow(6, D)
    ca_kvb = vrow(7, 2 * D)
    ca_ob = vrow(8, D)
    g3, b3 = vrow(9, D), vrow(10, D)
    ff_b1 = vrow(11, F)
    ff_b2 = vrow(12, D)
    mask_self = vecs_ref[m_self_row:m_self_row + t_q, 0:t_q]       # [T, T]  additive
    mask_cross = vecs_ref[m_cross_row:m_cross_row + t_q, 0:t_kv]   # [T, Ti] additive

    def layernorm(v, g, b):
        mu = jnp.mean(v, axis=-1, keepdims=True)
        vc = v - mu
        var = jnp.mean(vc * vc, axis=-1, keepdims=True)
        return vc * jax.lax.rsqrt(var + EPS) * g + b

    def attention(q, k, v, mask, ow_row, ob):
        """Multi-head attention.  Softmax scale is pre-folded into q; the head merge
        is fused into the output projection (per-head MXU accumulation against the
        matching 32-row sublane slice of the pre-transposed out-proj weight)."""
        qb, kb, vb = q.astype(bf16), k.astype(bf16), v.astype(bf16)
        acc = jnp.zeros((q.shape[0], D), f32)
        for h in range(H):                                  # static unroll, 4 heads
            lo, hi = h * Dh, (h + 1) * Dh
            s = jnp.einsum('qd,kd->qk', qb[:, lo:hi], kb[:, lo:hi],
                           preferred_element_type=f32) + mask        # [Tq, Tk]
            s = s - jnp.max(s, axis=-1, keepdims=True)
            p = jnp.exp(s)
            p = p * pl.reciprocal(jnp.sum(p, axis=-1, keepdims=True), approx=True)
            oh = jnp.dot(p.astype(bf16), vb[:, lo:hi],
                         preferred_element_type=f32)                 # [Tq, Dh]
            acc = acc + jnp.dot(oh.astype(bf16),
                                w128_ref[ow_row + lo:ow_row + hi, :],
                                preferred_element_type=f32)          # [Tq, D]
        return acc + ob

    # --- self attention sub-block (dropout == identity, eval semantics) ---
    x_res = x
    xn = layernorm(x, g1, b1)
    qkv = jnp.dot(xn.astype(bf16), w384_ref[...],
                  preferred_element_type=f32) + sa_inb               # [T, 3D]
    x = x_res + attention(qkv[:, :D], qkv[:, D:2 * D], qkv[:, 2 * D:],
                          mask_self, SA_OW_ROW, sa_ob)

    # --- cross attention with image embeddings ---
    x_res = x
    xn = layernorm(x, g2, b2)
    q = jnp.dot(xn.astype(bf16), w128_ref[CA_QW_ROW:CA_QW_ROW + D, :],
                preferred_element_type=f32) + ca_qb                  # [T, D]
    kv = jnp.dot(img.astype(bf16), w256_ref[CA_KVW_ROW:CA_KVW_ROW + D, :],
                 preferred_element_type=f32) + ca_kvb                # [Ti, 2D]
    x = x_res + attention(q, kv[:, :D], kv[:, D:],
                          mask_cross, CA_OW_ROW, ca_ob)

    # --- feed-forward ---
    x_res = x
    xn = layernorm(x, g3, b3)
    h1 = jnp.dot(xn.astype(bf16), w256_ref[W1_ROW:W1_ROW + D, :],
                 preferred_element_type=f32) + ff_b1                 # [T, F]
    h1 = jnp.maximum(h1, 0.0)                                        # ReLU
    ff = jnp.dot(h1.astype(bf16), w128_ref[W2_ROW:W2_ROW + F, :],
                 preferred_element_type=f32) + ff_b2                 # [T, D]
    x = x_res + ff

    out_ref[...] = x.astype(out_ref.dtype)


# ------------------------------ python wrapper ------------------------------

def qformer_block(x, image_embeds, params):
    Bx, Sx, Dx = x.shape
    Bi, Ix, _ = image_embeds.shape
    assert Bx == Bi and Dx == D_MODEL and Dx % NHEAD == 0

    T, Ti = Bx * Sx, Bx * Ix
    scale = 1.0 / math.sqrt(HEAD_DIM)
    f32, bf16 = jnp.float32, jnp.bfloat16

    # --- prepack weights once: pre-transpose, fold the softmax scale into the Q
    #     projections, cast MXU operands to bf16 (grid-invariant work stays here) ---
    sa_scale = jnp.concatenate(
        [jnp.full((Dx,), scale, f32), jnp.ones((2 * Dx,), f32)])
    sa_inwT = (params["sa_inw"] * sa_scale[:, None]).T.astype(bf16)     # [D, 3D]
    sa_inb = (params["sa_inb"] * sa_scale[None, :]).astype(f32)         # [1, 3D]

    ca_qwT = (params["ca_inw"][:Dx] * scale).T.astype(bf16)             # [D, D]
    ca_qb = (params["ca_inb"][:, :Dx] * scale).astype(f32)              # [1, D]
    ca_kvwT = params["ca_inw"][Dx:].T.astype(bf16)                      # [D, 2D]
    ca_kvb = params["ca_inb"][:, Dx:].astype(f32)                       # [1, 2D]

    # --- pack bf16 MXU weights into three buffers grouped by lane width ---
    w384 = sa_inwT                                                      # [D, 3D]
    w256 = jnp.concatenate([ca_kvwT,
                            params["w1"].T.astype(bf16)], axis=0)       # [2D, 2D]
    w128 = jnp.concatenate([params["sa_ow"].T.astype(bf16),
                            ca_qwT,
                            params["ca_ow"].T.astype(bf16),
                            params["w2"].T.astype(bf16)], axis=0)       # [3D+F, D]

    # --- pack every f32 LN/bias vector + both additive segment masks into ONE buffer ---
    width = max(3 * Dx, Ti, T)

    def padw(a):
        a = a.astype(f32)
        return jnp.pad(a, ((0, 0), (0, width - a.shape[1])))

    vec_rows = [params["g1"], params["b1"], sa_inb, params["sa_ob"],
                params["g2"], params["b2"], ca_qb, ca_kvb, params["ca_ob"],
                params["g3"], params["b3"], params["bf1"], params["bf2"]]
    n_vec = len(vec_rows)                                               # 13

    bq = jnp.arange(T) // Sx                 # batch id per folded token row
    bi = jnp.arange(Ti) // Ix                # batch id per folded image row
    mask_self = jnp.where(bq[:, None] == bq[None, :], 0.0, MASK_VALUE).astype(f32)
    mask_cross = jnp.where(bq[:, None] == bi[None, :], 0.0, MASK_VALUE).astype(f32)

    m_self_row = _round_up(n_vec, 8)
    m_cross_row = _round_up(m_self_row + T, 8)
    n_rows = m_cross_row + T

    vecs = jnp.zeros((n_rows, width), f32)
    vecs = vecs.at[:n_vec].set(jnp.concatenate([padw(r) for r in vec_rows], axis=0))
    vecs = vecs.at[m_self_row:m_self_row + T, :T].set(mask_self)
    vecs = vecs.at[m_cross_row:m_cross_row + T, :Ti].set(mask_cross)

    # --- fold batch into the token (sublane) dim: single invocation, all VMEM-resident ---
    x_flat = x.reshape(T, Dx)
    img_flat = image_embeds.reshape(Ti, Dx)

    # --- advisory cost estimate so XLA schedules this micro-kernel correctly ---
    Dh, F, H = HEAD_DIM, DIM_FF, NHEAD
    flops = 2 * (T * Dx * 3 * Dx            # self-attn fused QKV
                 + 2 * H * T * T * Dh       # self-attn scores + P@V
                 + T * Dx * Dx              # self-attn out proj
                 + T * Dx * Dx              # cross-attn Q
                 + Ti * Dx * 2 * Dx         # cross-attn fused KV
                 + 2 * H * T * Ti * Dh      # cross-attn scores + P@V
                 + T * Dx * Dx              # cross-attn out proj
                 + 2 * T * Dx * F)          # FFN
    transcendentals = H * T * (T + Ti) + 2 * H * T
    nbytes = lambda a: math.prod(a.shape) * a.dtype.itemsize
    operands = [x_flat, img_flat, w384, w256, w128, vecs]
    bytes_accessed = nbytes(x_flat) + sum(nbytes(a) for a in operands)

    out_flat = pl.pallas_call(
        partial(qformer_kernel, t_q=T, t_kv=Ti,
                m_self_row=m_self_row, m_cross_row=m_cross_row),
        out_shape=jax.ShapeDtypeStruct((T, Dx), x.dtype),
        cost_estimate=pl.CostEstimate(flops=int(flops),
                                      transcendentals=int(transcendentals),
                                      bytes_accessed=int(bytes_accessed)),
    )(x_flat, img_flat, w384, w256, w128, vecs)

    return out_flat.reshape(Bx, Sx, Dx)


# ---------------------- pure-JAX reference (for checking) -------------------
# f32 end-to-end, matching the PyTorch module exactly.

def _ref_mha(q_in, kv_in, in_w, in_b, out_w, out_b, nhead):
    D = q_in.shape[-1]
    Dh = D // nhead
    q = q_in @ in_w[:D].T + in_b[0, :D]
    k = kv_in @ in_w[D:2 * D].T + in_b[0, D:2 * D]
    v = kv_in @ in_w[2 * D:].T + in_b[0, 2 * D:]

    def split(t):
        return t.reshape(t.shape[0], t.shape[1], nhead, Dh).transpose(0, 2, 1, 3)

    qh, kh, vh = split(q), split(k), split(v)
    s = jnp.einsum("bhqd,bhkd->bhqk", qh * (1.0 / math.sqrt(Dh)), kh)
    p = jax.nn.softmax(s, axis=-1)
    o = jnp.einsum("bhqk,bhkd->bhqd", p, vh)
    o = o.transpose(0, 2, 1, 3).reshape(q.shape[0], q.shape[1], D)
    return o @ out_w.T + out_b[0]


def _ref_ln(x, g, b):
    mu = jnp.mean(x, axis=-1, keepdims=True)
    var = jnp.mean((x - mu) ** 2, axis=-1, keepdims=True)
    return (x - mu) * jax.lax.rsqrt(var + EPS) * g[0] + b[0]


def qformer_reference(x, img, p):
    x = x.astype(jnp.float32)
    img = img.astype(jnp.float32)
    x_res = x
    xn = _ref_ln(x, p["g1"], p["b1"])
    x = x_res + _ref_mha(xn, xn, p["sa_inw"], p["sa_inb"], p["sa_ow"], p["sa_ob"], NHEAD)
    x_res = x
    xn = _ref_ln(x, p["g2"], p["b2"])
    x = x_res + _ref_mha(xn, img, p["ca_inw"], p["ca_inb"], p["ca_ow"], p["ca_ob"], NHEAD)
    x_res = x
    xn = _ref_ln(x, p["g3"], p["b3"])
    ff = jax.nn.relu(xn @ p["w1"].T + p["bf1"][0]) @ p["w2"].T + p["bf2"][0]
    return x_res + ff


# ---------------------------------- main ------------------------------------

def make_params(key):
    ks = jax.random.split(key, 8)
    scale = 0.02

    def w(k, shape):
        return (scale * jax.random.normal(k, shape)).astype(jnp.float32)

    D, F = D_MODEL, DIM_FF
    return {
        "g1": jnp.ones((1, D), jnp.float32), "b1": jnp.zeros((1, D), jnp.float32),
        "sa_inw": w(ks[0], (3 * D, D)), "sa_inb": jnp.zeros((1, 3 * D), jnp.float32),
        "sa_ow": w(ks[1], (D, D)), "sa_ob": jnp.zeros((1, D), jnp.float32),
        "g2": jnp.ones((1, D), jnp.float32), "b2": jnp.zeros((1, D), jnp.float32),
        "ca_inw": w(ks[2], (3 * D, D)), "ca_inb": jnp.zeros((1, 3 * D), jnp.float32),
        "ca_ow": w(ks[3], (D, D)), "ca_ob": jnp.zeros((1, D), jnp.float32),
        "w1": w(ks[4], (F, D)), "bf1": jnp.zeros((1, F), jnp.float32),
        "w2": w(ks[5], (D, F)), "bf2": jnp.zeros((1, D), jnp.float32),
        "g3": jnp.ones((1, D), jnp.float32), "b3": jnp.zeros((1, D), jnp.float32),
    }


if __name__ == "__main__":
    key = jax.random.PRNGKey(0)
    kx, kimg, kp = jax.random.split(key, 3)

    x = jax.random.normal(kx, (B, S, D_MODEL), jnp.float32)
    image_embeds = jax.random.normal(kimg, (B, I, D_MODEL), jnp.float32)
    params = make_params(kp)

    out = qformer_block(x, image_embeds, params)
    out = jax.block_until_ready(out)

    ref = jax.block_until_ready(qformer_reference(x, image_embeds, params))
    assert out.shape == (B, S, D_MODEL)
    # bf16 MXU operands + approx reciprocal in the kernel vs a pure-f32 reference:
    # residual path stays exactly f32, attention/FFN branches carry ~1e-3 error.
    assert jnp.allclose(out, ref, atol=1e-2, rtol=1e-2), "Pallas output mismatch vs reference"

    print("KERNEL_OK")
</pallas_src>

<mosaic_0001>
module attributes {stable_mosaic.version = 11 : i64} {
  func.func @qformer_kernel(%arg0: memref<16x128xf32, #tpu.memory_space<vmem>>, %arg1: memref<32x128xf32, #tpu.memory_space<vmem>>, %arg2: memref<128x384xbf16, #tpu.memory_space<vmem>>, %arg3: memref<256x256xbf16, #tpu.memory_space<vmem>>, %arg4: memref<640x128xbf16, #tpu.memory_space<vmem>>, %arg5: memref<48x384xf32, #tpu.memory_space<vmem>>, %arg6: memref<16x128xf32, #tpu.memory_space<vmem>>) attributes {dimension_semantics = [], scalar_prefetch = 0 : i64, scratch_operands = 0 : i64, tpu.core_type = #tpu.core_type<tc>} {
    %c0 = arith.constant 0 : index
    %c0_0 = arith.constant 0 : index
    %0 = vector.load %arg0[%c0, %c0_0] : memref<16x128xf32, #tpu.memory_space<vmem>>, vector<16x128xf32>
    %c0_1 = arith.constant 0 : index
    %c0_2 = arith.constant 0 : index
    %1 = vector.load %arg1[%c0_1, %c0_2] : memref<32x128xf32, #tpu.memory_space<vmem>>, vector<32x128xf32>
    %c0_3 = arith.constant 0 : index
    %c0_4 = arith.constant 0 : index
    %2 = vector.load %arg5[%c0_3, %c0_4] : memref<48x384xf32, #tpu.memory_space<vmem>>, vector<1x128xf32>
    %c1 = arith.constant 1 : index
    %c0_5 = arith.constant 0 : index
    %3 = vector.load %arg5[%c1, %c0_5] : memref<48x384xf32, #tpu.memory_space<vmem>>, vector<1x128xf32>
    %c2 = arith.constant 2 : index
    %c0_6 = arith.constant 0 : index
    %4 = vector.load %arg5[%c2, %c0_6] : memref<48x384xf32, #tpu.memory_space<vmem>>, vector<1x384xf32>
    %c3 = arith.constant 3 : index
    %c0_7 = arith.constant 0 : index
    %5 = vector.load %arg5[%c3, %c0_7] : memref<48x384xf32, #tpu.memory_space<vmem>>, vector<1x128xf32>
    %c4 = arith.constant 4 : index
    %c0_8 = arith.constant 0 : index
    %6 = vector.load %arg5[%c4, %c0_8] : memref<48x384xf32, #tpu.memory_space<vmem>>, vector<1x128xf32>
    %c5 = arith.constant 5 : index
    %c0_9 = arith.constant 0 : index
    %7 = vector.load %arg5[%c5, %c0_9] : memref<48x384xf32, #tpu.memory_space<vmem>>, vector<1x128xf32>
    %c6 = arith.constant 6 : index
    %c0_10 = arith.constant 0 : index
    %8 = vector.load %arg5[%c6, %c0_10] : memref<48x384xf32, #tpu.memory_space<vmem>>, vector<1x128xf32>
    %c7 = arith.constant 7 : index
    %c0_11 = arith.constant 0 : index
    %9 = vector.load %arg5[%c7, %c0_11] : memref<48x384xf32, #tpu.memory_space<vmem>>, vector<1x256xf32>
    %c8 = arith.constant 8 : index
    %c0_12 = arith.constant 0 : index
    %10 = vector.load %arg5[%c8, %c0_12] : memref<48x384xf32, #tpu.memory_space<vmem>>, vector<1x128xf32>
    %c9 = arith.constant 9 : index
    %c0_13 = arith.constant 0 : index
    %11 = vector.load %arg5[%c9, %c0_13] : memref<48x384xf32, #tpu.memory_space<vmem>>, vector<1x128xf32>
    %c10 = arith.constant 10 : index
    %c0_14 = arith.constant 0 : index
    %12 = vector.load %arg5[%c10, %c0_14] : memref<48x384xf32, #tpu.memory_space<vmem>>, vector<1x128xf32>
    %c11 = arith.constant 11 : index
    %c0_15 = arith.constant 0 : index
    %13 = vector.load %arg5[%c11, %c0_15] : memref<48x384xf32, #tpu.memory_space<vmem>>, vector<1x256xf32>
    %c12 = arith.constant 12 : index
    %c0_16 = arith.constant 0 : index
    %14 = vector.load %arg5[%c12, %c0_16] : memref<48x384xf32, #tpu.memory_space<vmem>>, vector<1x128xf32>
    %c16 = arith.constant 16 : index
    %c0_17 = arith.constant 0 : index
    %15 = vector.load %arg5[%c16, %c0_17] : memref<48x384xf32, #tpu.memory_space<vmem>>, vector<16x16xf32>
    %c32 = arith.constant 32 : index
    %c0_18 = arith.constant 0 : index
    %16 = vector.load %arg5[%c32, %c0_18] : memref<48x384xf32, #tpu.memory_space<vmem>>, vector<16x32xf32>
    %cst = arith.constant dense<0.000000e+00> : vector<16xf32>
    %17 = vector.multi_reduction <add>, %0, %cst [1] : vector<16x128xf32> to vector<16xf32>
    %18 = vector.shape_cast %17 : vector<16xf32> to vector<16x1xf32>
    %cst_19 = arith.constant 1.280000e+02 : f32
    %19 = vector.broadcast %cst_19 : f32 to vector<16x1xf32>
    %20 = arith.divf %18, %19 : vector<16x1xf32>
    %21 = vector.broadcast %20 : vector<16x1xf32> to vector<16x128xf32>
    %22 = arith.subf %0, %21 : vector<16x128xf32>
    %23 = arith.mulf %22, %22 : vector<16x128xf32>
    %cst_20 = arith.constant dense<0.000000e+00> : vector<16xf32>
    %24 = vector.multi_reduction <add>, %23, %cst_20 [1] : vector<16x128xf32> to vector<16xf32>
    %25 = vector.shape_cast %24 : vector<16xf32> to vector<16x1xf32>
    %cst_21 = arith.constant 1.280000e+02 : f32
    %26 = vector.broadcast %cst_21 : f32 to vector<16x1xf32>
    %27 = arith.divf %25, %26 : vector<16x1xf32>
    %cst_22 = arith.constant 9.99999974E-6 : f32
    %28 = vector.broadcast %cst_22 : f32 to vector<16x1xf32>
    %29 = arith.addf %27, %28 : vector<16x1xf32>
    %30 = math.rsqrt %29 : vector<16x1xf32>
    %31 = vector.broadcast %30 : vector<16x1xf32> to vector<16x128xf32>
    %32 = arith.mulf %22, %31 : vector<16x128xf32>
    %33 = vector.broadcast %2 : vector<1x128xf32> to vector<16x128xf32>
    %34 = arith.mulf %32, %33 : vector<16x128xf32>
    %35 = vector.broadcast %3 : vector<1x128xf32> to vector<16x128xf32>
    %36 = arith.addf %34, %35 : vector<16x128xf32>
    %37 = arith.truncf %36 : vector<16x128xf32> to vector<16x128xbf16>
    %c0_23 = arith.constant 0 : index
    %c0_24 = arith.constant 0 : index
    %38 = vector.load %arg2[%c0_23, %c0_24] : memref<128x384xbf16, #tpu.memory_space<vmem>>, vector<128x384xbf16>
    %cst_25 = arith.constant dense<0.000000e+00> : vector<16x384xf32>
    %39 = tpu.matmul %37, %38, %cst_25 {dimension_numbers = #tpu.dot_dimension_numbers<[1], [0], [0], [1], [0, 0, 1, 1], [], []>} : vector<16x128xbf16>, vector<128x384xbf16>, vector<16x384xf32> -> vector<16x384xf32>
    %40 = vector.broadcast %4 : vector<1x384xf32> to vector<16x384xf32>
    %41 = arith.addf %39, %40 : vector<16x384xf32>
    %42 = vector.extract_strided_slice %41 {offsets = [0, 0], sizes = [16, 128], strides = [1, 1]} : vector<16x384xf32> to vector<16x128xf32>
    %43 = vector.extract_strided_slice %41 {offsets = [0, 128], sizes = [16, 128], strides = [1, 1]} : vector<16x384xf32> to vector<16x128xf32>
    %44 = vector.extract_strided_slice %41 {offsets = [0, 256], sizes = [16, 128], strides = [1, 1]} : vector<16x384xf32> to vector<16x128xf32>
    %45 = arith.truncf %42 : vector<16x128xf32> to vector<16x128xbf16>
    %46 = arith.truncf %43 : vector<16x128xf32> to vector<16x128xbf16>
    %47 = arith.truncf %44 : vector<16x128xf32> to vector<16x128xbf16>
    %cst_26 = arith.constant 0.000000e+00 : f32
    %48 = vector.broadcast %cst_26 : f32 to vector<16x128xf32>
    %49 = vector.extract_strided_slice %45 {offsets = [0, 0], sizes = [16, 32], strides = [1, 1]} : vector<16x128xbf16> to vector<16x32xbf16>
    %50 = vector.extract_strided_slice %46 {offsets = [0, 0], sizes = [16, 32], strides = [1, 1]} : vector<16x128xbf16> to vector<16x32xbf16>
    "tpu.trace_start"() <{level = 10 : i32, message = "qd,kd->qk"}> : () -> ()
    %cst_27 = arith.constant dense<0.000000e+00> : vector<16x16xf32>
    %51 = tpu.matmul %49, %50, %cst_27 {dimension_numbers = #tpu.dot_dimension_numbers<[1], [1], [0], [0], [0, 0, 1, 0], [], []>} : vector<16x32xbf16>, vector<16x32xbf16>, vector<16x16xf32> -> vector<16x16xf32>
    "tpu.trace_stop"() : () -> ()
    %52 = arith.addf %51, %15 : vector<16x16xf32>
    %cst_28 = arith.constant dense<0xFF800000> : vector<16xf32>
    %53 = vector.multi_reduction <maximumf>, %52, %cst_28 [1] : vector<16x16xf32> to vector<16xf32>
    %54 = vector.shape_cast %53 : vector<16xf32> to vector<16x1xf32>
    %55 = vector.broadcast %54 : vector<16x1xf32> to vector<16x16xf32>
    %56 = arith.subf %52, %55 : vector<16x16xf32>
    %57 = math.exp %56 : vector<16x16xf32>
    %cst_29 = arith.constant dense<0.000000e+00> : vector<16xf32>
    %58 = vector.multi_reduction <add>, %57, %cst_29 [1] : vector<16x16xf32> to vector<16xf32>
    %59 = vector.shape_cast %58 : vector<16xf32> to vector<16x1xf32>
    %60 = tpu.reciprocal %59 {approx = true} : vector<16x1xf32> -> vector<16x1xf32>
    %61 = vector.broadcast %60 : vector<16x1xf32> to vector<16x16xf32>
    %62 = arith.mulf %57, %61 : vector<16x16xf32>
    %63 = arith.truncf %62 : vector<16x16xf32> to vector<16x16xbf16>
    %64 = vector.extract_strided_slice %47 {offsets = [0, 0], sizes = [16, 32], strides = [1, 1]} : vector<16x128xbf16> to vector<16x32xbf16>
    %cst_30 = arith.constant dense<0.000000e+00> : vector<16x32xf32>
    %65 = tpu.matmul %63, %64, %cst_30 {dimension_numbers = #tpu.dot_dimension_numbers<[1], [0], [0], [1], [0, 0, 1, 1], [], []>} : vector<16x16xbf16>, vector<16x32xbf16>, vector<16x32xf32> -> vector<16x32xf32>
    %66 = arith.truncf %65 : vector<16x32xf32> to vector<16x32xbf16>
    %c0_31 = arith.constant 0 : index
    %c0_32 = arith.constant 0 : index
    %67 = vector.load %arg4[%c0_31, %c0_32] : memref<640x128xbf16, #tpu.memory_space<vmem>>, vector<32x128xbf16>
    %cst_33 = arith.constant dense<0.000000e+00> : vector<16x128xf32>
    %68 = tpu.matmul %66, %67, %cst_33 {dimension_numbers = #tpu.dot_dimension_numbers<[1], [0], [0], [1], [0, 0, 1, 1], [], []>} : vector<16x32xbf16>, vector<32x128xbf16>, vector<16x128xf32> -> vector<16x128xf32>
    %69 = arith.addf %48, %68 : vector<16x128xf32>
    %70 = vector.extract_strided_slice %45 {offsets = [0, 32], sizes = [16, 32], strides = [1, 1]} : vector<16x128xbf16> to vector<16x32xbf16>
    %71 = vector.extract_strided_slice %46 {offsets = [0, 32], sizes = [16, 32], strides = [1, 1]} : vector<16x128xbf16> to vector<16x32xbf16>
    "tpu.trace_start"() <{level = 10 : i32, message = "qd,kd->qk"}> : () -> ()
    %cst_34 = arith.constant dense<0.000000e+00> : vector<16x16xf32>
    %72 = tpu.matmul %70, %71, %cst_34 {dimension_numbers = #tpu.dot_dimension_numbers<[1], [1], [0], [0], [0, 0, 1, 0], [], []>} : vector<16x32xbf16>, vector<16x32xbf16>, vector<16x16xf32> -> vector<16x16xf32>
    "tpu.trace_stop"() : () -> ()
    %73 = arith.addf %72, %15 : vector<16x16xf32>
    %cst_35 = arith.constant dense<0xFF800000> : vector<16xf32>
    %74 = vector.multi_reduction <maximumf>, %73, %cst_35 [1] : vector<16x16xf32> to vector<16xf32>
    %75 = vector.shape_cast %74 : vector<16xf32> to vector<16x1xf32>
    %76 = vector.broadcast %75 : vector<16x1xf32> to vector<16x16xf32>
    %77 = arith.subf %73, %76 : vector<16x16xf32>
    %78 = math.exp %77 : vector<16x16xf32>
    %cst_36 = arith.constant dense<0.000000e+00> : vector<16xf32>
    %79 = vector.multi_reduction <add>, %78, %cst_36 [1] : vector<16x16xf32> to vector<16xf32>
    %80 = vector.shape_cast %79 : vector<16xf32> to vector<16x1xf32>
    %81 = tpu.reciprocal %80 {approx = true} : vector<16x1xf32> -> vector<16x1xf32>
    %82 = vector.broadcast %81 : vector<16x1xf32> to vector<16x16xf32>
    %83 = arith.mulf %78, %82 : vector<16x16xf32>
    %84 = arith.truncf %83 : vector<16x16xf32> to vector<16x16xbf16>
    %85 = vector.extract_strided_slice %47 {offsets = [0, 32], sizes = [16, 32], strides = [1, 1]} : vector<16x128xbf16> to vector<16x32xbf16>
    %cst_37 = arith.constant dense<0.000000e+00> : vector<16x32xf32>
    %86 = tpu.matmul %84, %85, %cst_37 {dimension_numbers = #tpu.dot_dimension_numbers<[1], [0], [0], [1], [0, 0, 1, 1], [], []>} : vector<16x16xbf16>, vector<16x32xbf16>, vector<16x32xf32> -> vector<16x32xf32>
    %87 = arith.truncf %86 : vector<16x32xf32> to vector<16x32xbf16>
    %c32_38 = arith.constant 32 : index
    %c0_39 = arith.constant 0 : index
    %88 = vector.load %arg4[%c32_38, %c0_39] : memref<640x128xbf16, #tpu.memory_space<vmem>>, vector<32x128xbf16>
    %cst_40 = arith.constant dense<0.000000e+00> : vector<16x128xf32>
    %89 = tpu.matmul %87, %88, %cst_40 {dimension_numbers = #tpu.dot_dimension_numbers<[1], [0], [0], [1], [0, 0, 1, 1], [], []>} : vector<16x32xbf16>, vector<32x128xbf16>, vector<16x128xf32> -> vector<16x128xf32>
    %90 = arith.addf %69, %89 : vector<16x128xf32>
    %91 = vector.extract_strided_slice %45 {offsets = [0, 64], sizes = [16, 32], strides = [1, 1]} : vector<16x128xbf16> to vector<16x32xbf16>
    %92 = vector.extract_strided_slice %46 {offsets = [0, 64], sizes = [16, 32], strides = [1, 1]} : vector<16x128xbf16> to vector<16x32xbf16>
    "tpu.trace_start"() <{level = 10 : i32, message = "qd,kd->qk"}> : () -> ()
    %cst_41 = arith.constant dense<0.000000e+00> : vector<16x16xf32>
    %93 = tpu.matmul %91, %92, %cst_41 {dimension_numbers = #tpu.dot_dimension_numbers<[1], [1], [0], [0], [0, 0, 1, 0], [], []>} : vector<16x32xbf16>, vector<16x32xbf16>, vector<16x16xf32> -> vector<16x16xf32>
    "tpu.trace_stop"() : () -> ()
    %94 = arith.addf %93, %15 : vector<16x16xf32>
    %cst_42 = arith.constant dense<0xFF800000> : vector<16xf32>
    %95 = vector.multi_reduction <maximumf>, %94, %cst_42 [1] : vector<16x16xf32> to vector<16xf32>
    %96 = vector.shape_cast %95 : vector<16xf32> to vector<16x1xf32>
    %97 = vector.broadcast %96 : vector<16x1xf32> to vector<16x16xf32>
    %98 = arith.subf %94, %97 : vector<16x16xf32>
    %99 = math.exp %98 : vector<16x16xf32>
    %cst_43 = arith.constant dense<0.000000e+00> : vector<16xf32>
    %100 = vector.multi_reduction <add>, %99, %cst_43 [1] : vector<16x16xf32> to vector<16xf32>
    %101 = vector.shape_cast %100 : vector<16xf32> to vector<16x1xf32>
    %102 = tpu.reciprocal %101 {approx = true} : vector<16x1xf32> -> vector<16x1xf32>
    %103 = vector.broadcast %102 : vector<16x1xf32> to vector<16x16xf32>
    %104 = arith.mulf %99, %103 : vector<16x16xf32>
    %105 = arith.truncf %104 : vector<16x16xf32> to vector<16x16xbf16>
    %106 = vector.extract_strided_slice %47 {offsets = [0, 64], sizes = [16, 32], strides = [1, 1]} : vector<16x128xbf16> to vector<16x32xbf16>
    %cst_44 = arith.constant dense<0.000000e+00> : vector<16x32xf32>
    %107 = tpu.matmul %105, %106, %cst_44 {dimension_numbers = #tpu.dot_dimension_numbers<[1], [0], [0], [1], [0, 0, 1, 1], [], []>} : vector<16x16xbf16>, vector<16x32xbf16>, vector<16x32xf32> -> vector<16x32xf32>
    %108 = arith.truncf %107 : vector<16x32xf32> to vector<16x32xbf16>
    %c64 = arith.constant 64 : index
    %c0_45 = arith.constant 0 : index
    %109 = vector.load %arg4[%c64, %c0_45] : memref<640x128xbf16, #tpu.memory_space<vmem>>, vector<32x128xbf16>
    %cst_46 = arith.constant dense<0.000000e+00> : vector<16x128xf32>
    %110 = tpu.matmul %108, %109, %cst_46 {dimension_numbers = #tpu.dot_dimension_numbers<[1], [0], [0], [1], [0, 0, 1, 1], [], []>} : vector<16x32xbf16>, vector<32x128xbf16>, vector<16x128xf32> -> vector<16x128xf32>
    %111 = arith.addf %90, %110 : vector<16x128xf32>
    %112 = vector.extract_strided_slice %45 {offsets = [0, 96], sizes = [16, 32], strides = [1, 1]} : vector<16x128xbf16> to vector<16x32xbf16>
    %113 = vector.extract_strided_slice %46 {offsets = [0, 96], sizes = [16, 32], strides = [1, 1]} : vector<16x128xbf16> to vector<16x32xbf16>
    "tpu.trace_start"() <{level = 10 : i32, message = "qd,kd->qk"}> : () -> ()
    %cst_47 = arith.constant dense<0.000000e+00> : vector<16x16xf32>
    %114 = tpu.matmul %112, %113, %cst_47 {dimension_numbers = #tpu.dot_dimension_numbers<[1], [1], [0], [0], [0, 0, 1, 0], [], []>} : vector<16x32xbf16>, vector<16x32xbf16>, vector<16x16xf32> -> vector<16x16xf32>
    "tpu.trace_stop"() : () -> ()
    %115 = arith.addf %114, %15 : vector<16x16xf32>
    %cst_48 = arith.constant dense<0xFF800000> : vector<16xf32>
    %116 = vector.multi_reduction <maximumf>, %115, %cst_48 [1] : vector<16x16xf32> to vector<16xf32>
    %117 = vector.shape_cast %116 : vector<16xf32> to vector<16x1xf32>
    %118 = vector.broadcast %117 : vector<16x1xf32> to vector<16x16xf32>
    %119 = arith.subf %115, %118 : vector<16x16xf32>
    %120 = math.exp %119 : vector<16x16xf32>
    %cst_49 = arith.constant dense<0.000000e+00> : vector<16xf32>
    %121 = vector.multi_reduction <add>, %120, %cst_49 [1] : vector<16x16xf32> to vector<16xf32>
    %122 = vector.shape_cast %121 : vector<16xf32> to vector<16x1xf32>
    %123 = tpu.reciprocal %122 {approx = true} : vector<16x1xf32> -> vector<16x1xf32>
    %124 = vector.broadcast %123 : vector<16x1xf32> to vector<16x16xf32>
    %125 = arith.mulf %120, %124 : vector<16x16xf32>
    %126 = arith.truncf %125 : vector<16x16xf32> to vector<16x16xbf16>
    %127 = vector.extract_strided_slice %47 {offsets = [0, 96], sizes = [16, 32], strides = [1, 1]} : vector<16x128xbf16> to vector<16x32xbf16>
    %cst_50 = arith.constant dense<0.000000e+00> : vector<16x32xf32>
    %128 = tpu.matmul %126, %127, %cst_50 {dimension_numbers = #tpu.dot_dimension_numbers<[1], [0], [0], [1], [0, 0, 1, 1], [], []>} : vector<16x16xbf16>, vector<16x32xbf16>, vector<16x32xf32> -> vector<16x32xf32>
    %129 = arith.truncf %128 : vector<16x32xf32> to vector<16x32xbf16>
    %c96 = arith.constant 96 : index
    %c0_51 = arith.constant 0 : index
    %130 = vector.load %arg4[%c96, %c0_51] : memref<640x128xbf16, #tpu.memory_space<vmem>>, vector<32x128xbf16>
    %cst_52 = arith.constant dense<0.000000e+00> : vector<16x128xf32>
    %131 = tpu.matmul %129, %130, %cst_52 {dimension_numbers = #tpu.dot_dimension_numbers<[1], [0], [0], [1], [0, 0, 1, 1], [], []>} : vector<16x32xbf16>, vector<32x128xbf16>, vector<16x128xf32> -> vector<16x128xf32>
    %132 = arith.addf %111, %131 : vector<16x128xf32>
    %133 = vector.broadcast %5 : vector<1x128xf32> to vector<16x128xf32>
    %134 = arith.addf %132, %133 : vector<16x128xf32>
    %135 = arith.addf %0, %134 : vector<16x128xf32>
    %cst_53 = arith.constant dense<0.000000e+00> : vector<16xf32>
    %136 = vector.multi_reduction <add>, %135, %cst_53 [1] : vector<16x128xf32> to vector<16xf32>
    %137 = vector.shape_cast %136 : vector<16xf32> to vector<16x1xf32>
    %cst_54 = arith.constant 1.280000e+02 : f32
    %138 = vector.broadcast %cst_54 : f32 to vector<16x1xf32>
    %139 = arith.divf %137, %138 : vector<16x1xf32>
    %140 = vector.broadcast %139 : vector<16x1xf32> to vector<16x128xf32>
    %141 = arith.subf %135, %140 : vector<16x128xf32>
    %142 = arith.mulf %141, %141 : vector<16x128xf32>
    %cst_55 = arith.constant dense<0.000000e+00> : vector<16xf32>
    %143 = vector.multi_reduction <add>, %142, %cst_55 [1] : vector<16x128xf32> to vector<16xf32>
    %144 = vector.shape_cast %143 : vector<16xf32> to vector<16x1xf32>
    %cst_56 = arith.constant 1.280000e+02 : f32
    %145 = vector.broadcast %cst_56 : f32 to vector<16x1xf32>
    %146 = arith.divf %144, %145 : vector<16x1xf32>
    %cst_57 = arith.constant 9.99999974E-6 : f32
    %147 = vector.broadcast %cst_57 : f32 to vector<16x1xf32>
    %148 = arith.addf %146, %147 : vector<16x1xf32>
    %149 = math.rsqrt %148 : vector<16x1xf32>
    %150 = vector.broadcast %149 : vector<16x1xf32> to vector<16x128xf32>
    %151 = arith.mulf %141, %150 : vector<16x128xf32>
    %152 = vector.broadcast %6 : vector<1x128xf32> to vector<16x128xf32>
    %153 = arith.mulf %151, %152 : vector<16x128xf32>
    %154 = vector.broadcast %7 : vector<1x128xf32> to vector<16x128xf32>
    %155 = arith.addf %153, %154 : vector<16x128xf32>
    %156 = arith.truncf %155 : vector<16x128xf32> to vector<16x128xbf16>
    %c128 = arith.constant 128 : index
    %c0_58 = arith.constant 0 : index
    %157 = vector.load %arg4[%c128, %c0_58] : memref<640x128xbf16, #tpu.memory_space<vmem>>, vector<128x128xbf16>
    %cst_59 = arith.constant dense<0.000000e+00> : vector<16x128xf32>
    %158 = tpu.matmul %156, %157, %cst_59 {dimension_numbers = #tpu.dot_dimension_numbers<[1], [0], [0], [1], [0, 0, 1, 1], [], []>} : vector<16x128xbf16>, vector<128x128xbf16>, vector<16x128xf32> -> vector<16x128xf32>
    %159 = vector.broadcast %8 : vector<1x128xf32> to vector<16x128xf32>
    %160 = arith.addf %158, %159 : vector<16x128xf32>
    %161 = arith.truncf %1 : vector<32x128xf32> to vector<32x128xbf16>
    %c0_60 = arith.constant 0 : index
    %c0_61 = arith.constant 0 : index
    %162 = vector.load %arg3[%c0_60, %c0_61] : memref<256x256xbf16, #tpu.memory_space<vmem>>, vector<128x256xbf16>
    %cst_62 = arith.constant dense<0.000000e+00> : vector<32x256xf32>
    %163 = tpu.matmul %161, %162, %cst_62 {dimension_numbers = #tpu.dot_dimension_numbers<[1], [0], [0], [1], [0, 0, 1, 1], [], []>} : vector<32x128xbf16>, vector<128x256xbf16>, vector<32x256xf32> -> vector<32x256xf32>
    %164 = vector.broadcast %9 : vector<1x256xf32> to vector<32x256xf32>
    %165 = arith.addf %163, %164 : vector<32x256xf32>
    %166 = vector.extract_strided_slice %165 {offsets = [0, 0], sizes = [32, 128], strides = [1, 1]} : vector<32x256xf32> to vector<32x128xf32>
    %167 = vector.extract_strided_slice %165 {offsets = [0, 128], sizes = [32, 128], strides = [1, 1]} : vector<32x256xf32> to vector<32x128xf32>
    %168 = arith.truncf %160 : vector<16x128xf32> to vector<16x128xbf16>
    %169 = arith.truncf %166 : vector<32x128xf32> to vector<32x128xbf16>
    %170 = arith.truncf %167 : vector<32x128xf32> to vector<32x128xbf16>
    %cst_63 = arith.constant 0.000000e+00 : f32
    %171 = vector.broadcast %cst_63 : f32 to vector<16x128xf32>
    %172 = vector.extract_strided_slice %168 {offsets = [0, 0], sizes = [16, 32], strides = [1, 1]} : vector<16x128xbf16> to vector<16x32xbf16>
    %173 = vector.extract_strided_slice %169 {offsets = [0, 0], sizes = [32, 32], strides = [1, 1]} : vector<32x128xbf16> to vector<32x32xbf16>
    "tpu.trace_start"() <{level = 10 : i32, message = "qd,kd->qk"}> : () -> ()
    %cst_64 = arith.constant dense<0.000000e+00> : vector<16x32xf32>
    %174 = tpu.matmul %172, %173, %cst_64 {dimension_numbers = #tpu.dot_dimension_numbers<[1], [1], [0], [0], [0, 0, 1, 0], [], []>} : vector<16x32xbf16>, vector<32x32xbf16>, vector<16x32xf32> -> vector<16x32xf32>
    "tpu.trace_stop"() : () -> ()
    %175 = arith.addf %174, %16 : vector<16x32xf32>
    %cst_65 = arith.constant dense<0xFF800000> : vector<16xf32>
    %176 = vector.multi_reduction <maximumf>, %175, %cst_65 [1] : vector<16x32xf32> to vector<16xf32>
    %177 = vector.shape_cast %176 : vector<16xf32> to vector<16x1xf32>
    %178 = vector.broadcast %177 : vector<16x1xf32> to vector<16x32xf32>
    %179 = arith.subf %175, %178 : vector<16x32xf32>
    %180 = math.exp %179 : vector<16x32xf32>
    %cst_66 = arith.constant dense<0.000000e+00> : vector<16xf32>
    %181 = vector.multi_reduction <add>, %180, %cst_66 [1] : vector<16x32xf32> to vector<16xf32>
    %182 = vector.shape_cast %181 : vector<16xf32> to vector<16x1xf32>
    %183 = tpu.reciprocal %182 {approx = true} : vector<16x1xf32> -> vector<16x1xf32>
    %184 = vector.broadcast %183 : vector<16x1xf32> to vector<16x32xf32>
    %185 = arith.mulf %180, %184 : vector<16x32xf32>
    %186 = arith.truncf %185 : vector<16x32xf32> to vector<16x32xbf16>
    %187 = vector.extract_strided_slice %170 {offsets = [0, 0], sizes = [32, 32], strides = [1, 1]} : vector<32x128xbf16> to vector<32x32xbf16>
    %cst_67 = arith.constant dense<0.000000e+00> : vector<16x32xf32>
    %188 = tpu.matmul %186, %187, %cst_67 {dimension_numbers = #tpu.dot_dimension_numbers<[1], [0], [0], [1], [0, 0, 1, 1], [], []>} : vector<16x32xbf16>, vector<32x32xbf16>, vector<16x32xf32> -> vector<16x32xf32>
    %189 = arith.truncf %188 : vector<16x32xf32> to vector<16x32xbf16>
    %c256 = arith.constant 256 : index
    %c0_68 = arith.constant 0 : index
    %190 = vector.load %arg4[%c256, %c0_68] : memref<640x128xbf16, #tpu.memory_space<vmem>>, vector<32x128xbf16>
    %cst_69 = arith.constant dense<0.000000e+00> : vector<16x128xf32>
    %191 = tpu.matmul %189, %190, %cst_69 {dimension_numbers = #tpu.dot_dimension_numbers<[1], [0], [0], [1], [0, 0, 1, 1], [], []>} : vector<16x32xbf16>, vector<32x128xbf16>, vector<16x128xf32> -> vector<16x128xf32>
    %192 = arith.addf %171, %191 : vector<16x128xf32>
    %193 = vector.extract_strided_slice %168 {offsets = [0, 32], sizes = [16, 32], strides = [1, 1]} : vector<16x128xbf16> to vector<16x32xbf16>
    %194 = vector.extract_strided_slice %169 {offsets = [0, 32], sizes = [32, 32], strides = [1, 1]} : vector<32x128xbf16> to vector<32x32xbf16>
    "tpu.trace_start"() <{level = 10 : i32, message = "qd,kd->qk"}> : () -> ()
    %cst_70 = arith.constant dense<0.000000e+00> : vector<16x32xf32>
    %195 = tpu.matmul %193, %194, %cst_70 {dimension_numbers = #tpu.dot_dimension_numbers<[1], [1], [0], [0], [0, 0, 1, 0], [], []>} : vector<16x32xbf16>, vector<32x32xbf16>, vector<16x32xf32> -> vector<16x32xf32>
    "tpu.trace_stop"() : () -> ()
    %196 = arith.addf %195, %16 : vector<16x32xf32>
    %cst_71 = arith.constant dense<0xFF800000> : vector<16xf32>
    %197 = vector.multi_reduction <maximumf>, %196, %cst_71 [1] : vector<16x32xf32> to vector<16xf32>
    %198 = vector.shape_cast %197 : vector<16xf32> to vector<16x1xf32>
    %199 = vector.broadcast %198 : vector<16x1xf32> to vector<16x32xf32>
    %200 = arith.subf %196, %199 : vector<16x32xf32>
    %201 = math.exp %200 : vector<16x32xf32>
    %cst_72 = arith.constant dense<0.000000e+00> : vector<16xf32>
    %202 = vector.multi_reduction <add>, %201, %cst_72 [1] : vector<16x32xf32> to vector<16xf32>
    %203 = vector.shape_cast %202 : vector<16xf32> to vector<16x1xf32>
    %204 = tpu.reciprocal %203 {approx = true} : vector<16x1xf32> -> vector<16x1xf32>
    %205 = vector.broadcast %204 : vector<16x1xf32> to vector<16x32xf32>
    %206 = arith.mulf %201, %205 : vector<16x32xf32>
    %207 = arith.truncf %206 : vector<16x32xf32> to vector<16x32xbf16>
    %208 = vector.extract_strided_slice %170 {offsets = [0, 32], sizes = [32, 32], strides = [1, 1]} : vector<32x128xbf16> to vector<32x32xbf16>
    %cst_73 = arith.constant dense<0.000000e+00> : vector<16x32xf32>
    %209 = tpu.matmul %207, %208, %cst_73 {dimension_numbers = #tpu.dot_dimension_numbers<[1], [0], [0], [1], [0, 0, 1, 1], [], []>} : vector<16x32xbf16>, vector<32x32xbf16>, vector<16x32xf32> -> vector<16x32xf32>
    %210 = arith.truncf %209 : vector<16x32xf32> to vector<16x32xbf16>
    %c288 = arith.constant 288 : index
    %c0_74 = arith.constant 0 : index
    %211 = vector.load %arg4[%c288, %c0_74] : memref<640x128xbf16, #tpu.memory_space<vmem>>, vector<32x128xbf16>
    %cst_75 = arith.constant dense<0.000000e+00> : vector<16x128xf32>
    %212 = tpu.matmul %210, %211, %cst_75 {dimension_numbers = #tpu.dot_dimension_numbers<[1], [0], [0], [1], [0, 0, 1, 1], [], []>} : vector<16x32xbf16>, vector<32x128xbf16>, vector<16x128xf32> -> vector<16x128xf32>
    %213 = arith.addf %192, %212 : vector<16x128xf32>
    %214 = vector.extract_strided_slice %168 {offsets = [0, 64], sizes = [16, 32], strides = [1, 1]} : vector<16x128xbf16> to vector<16x32xbf16>
    %215 = vector.extract_strided_slice %169 {offsets = [0, 64], sizes = [32, 32], strides = [1, 1]} : vector<32x128xbf16> to vector<32x32xbf16>
    "tpu.trace_start"() <{level = 10 : i32, message = "qd,kd->qk"}> : () -> ()
    %cst_76 = arith.constant dense<0.000000e+00> : vector<16x32xf32>
    %216 = tpu.matmul %214, %215, %cst_76 {dimension_numbers = #tpu.dot_dimension_numbers<[1], [1], [0], [0], [0, 0, 1, 0], [], []>} : vector<16x32xbf16>, vector<32x32xbf16>, vector<16x32xf32> -> vector<16x32xf32>
    "tpu.trace_stop"() : () -> ()
    %217 = arith.addf %216, %16 : vector<16x32xf32>
    %cst_77 = arith.constant dense<0xFF800000> : vector<16xf32>
    %218 = vector.multi_reduction <maximumf>, %217, %cst_77 [1] : vector<16x32xf32> to vector<16xf32>
    %219 = vector.shape_cast %218 : vector<16xf32> to vector<16x1xf32>
    %220 = vector.broadcast %219 : vector<16x1xf32> to vector<16x32xf32>
    %221 = arith.subf %217, %220 : vector<16x32xf32>
    %222 = math.exp %221 : vector<16x32xf32>
    %cst_78 = arith.constant dense<0.000000e+00> : vector<16xf32>
    %223 = vector.multi_reduction <add>, %222, %cst_78 [1] : vector<16x32xf32> to vector<16xf32>
    %224 = vector.shape_cast %223 : vector<16xf32> to vector<16x1xf32>
    %225 = tpu.reciprocal %224 {approx = true} : vector<16x1xf32> -> vector<16x1xf32>
    %226 = vector.broadcast %225 : vector<16x1xf32> to vector<16x32xf32>
    %227 = arith.mulf %222, %226 : vector<16x32xf32>
    %228 = arith.truncf %227 : vector<16x32xf32> to vector<16x32xbf16>
    %229 = vector.extract_strided_slice %170 {offsets = [0, 64], sizes = [32, 32], strides = [1, 1]} : vector<32x128xbf16> to vector<32x32xbf16>
    %cst_79 = arith.constant dense<0.000000e+00> : vector<16x32xf32>
    %230 = tpu.matmul %228, %229, %cst_79 {dimension_numbers = #tpu.dot_dimension_numbers<[1], [0], [0], [1], [0, 0, 1, 1], [], []>} : vector<16x32xbf16>, vector<32x32xbf16>, vector<16x32xf32> -> vector<16x32xf32>
    %231 = arith.truncf %230 : vector<16x32xf32> to vector<16x32xbf16>
    %c320 = arith.constant 320 : index
    %c0_80 = arith.constant 0 : index
    %232 = vector.load %arg4[%c320, %c0_80] : memref<640x128xbf16, #tpu.memory_space<vmem>>, vector<32x128xbf16>
    %cst_81 = arith.constant dense<0.000000e+00> : vector<16x128xf32>
    %233 = tpu.matmul %231, %232, %cst_81 {dimension_numbers = #tpu.dot_dimension_numbers<[1], [0], [0], [1], [0, 0, 1, 1], [], []>} : vector<16x32xbf16>, vector<32x128xbf16>, vector<16x128xf32> -> vector<16x128xf32>
    %234 = arith.addf %213, %233 : vector<16x128xf32>
    %235 = vector.extract_strided_slice %168 {offsets = [0, 96], sizes = [16, 32], strides = [1, 1]} : vector<16x128xbf16> to vector<16x32xbf16>
    %236 = vector.extract_strided_slice %169 {offsets = [0, 96], sizes = [32, 32], strides = [1, 1]} : vector<32x128xbf16> to vector<32x32xbf16>
    "tpu.trace_start"() <{level = 10 : i32, message = "qd,kd->qk"}> : () -> ()
    %cst_82 = arith.constant dense<0.000000e+00> : vector<16x32xf32>
    %237 = tpu.matmul %235, %236, %cst_82 {dimension_numbers = #tpu.dot_dimension_numbers<[1], [1], [0], [0], [0, 0, 1, 0], [], []>} : vector<16x32xbf16>, vector<32x32xbf16>, vector<16x32xf32> -> vector<16x32xf32>
    "tpu.trace_stop"() : () -> ()
    %238 = arith.addf %237, %16 : vector<16x32xf32>
    %cst_83 = arith.constant dense<0xFF800000> : vector<16xf32>
    %239 = vector.multi_reduction <maximumf>, %238, %cst_83 [1] : vector<16x32xf32> to vector<16xf32>
    %240 = vector.shape_cast %239 : vector<16xf32> to vector<16x1xf32>
    %241 = vector.broadcast %240 : vector<16x1xf32> to vector<16x32xf32>
    %242 = arith.subf %238, %241 : vector<16x32xf32>
    %243 = math.exp %242 : vector<16x32xf32>
    %cst_84 = arith.constant dense<0.000000e+00> : vector<16xf32>
    %244 = vector.multi_reduction <add>, %243, %cst_84 [1] : vector<16x32xf32> to vector<16xf32>
    %245 = vector.shape_cast %244 : vector<16xf32> to vector<16x1xf32>
    %246 = tpu.reciprocal %245 {approx = true} : vector<16x1xf32> -> vector<16x1xf32>
    %247 = vector.broadcast %246 : vector<16x1xf32> to vector<16x32xf32>
    %248 = arith.mulf %243, %247 : vector<16x32xf32>
    %249 = arith.truncf %248 : vector<16x32xf32> to vector<16x32xbf16>
    %250 = vector.extract_strided_slice %170 {offsets = [0, 96], sizes = [32, 32], strides = [1, 1]} : vector<32x128xbf16> to vector<32x32xbf16>
    %cst_85 = arith.constant dense<0.000000e+00> : vector<16x32xf32>
    %251 = tpu.matmul %249, %250, %cst_85 {dimension_numbers = #tpu.dot_dimension_numbers<[1], [0], [0], [1], [0, 0, 1, 1], [], []>} : vector<16x32xbf16>, vector<32x32xbf16>, vector<16x32xf32> -> vector<16x32xf32>
    %252 = arith.truncf %251 : vector<16x32xf32> to vector<16x32xbf16>
    %c352 = arith.constant 352 : index
    %c0_86 = arith.constant 0 : index
    %253 = vector.load %arg4[%c352, %c0_86] : memref<640x128xbf16, #tpu.memory_space<vmem>>, vector<32x128xbf16>
    %cst_87 = arith.constant dense<0.000000e+00> : vector<16x128xf32>
    %254 = tpu.matmul %252, %253, %cst_87 {dimension_numbers = #tpu.dot_dimension_numbers<[1], [0], [0], [1], [0, 0, 1, 1], [], []>} : vector<16x32xbf16>, vector<32x128xbf16>, vector<16x128xf32> -> vector<16x128xf32>
    %255 = arith.addf %234, %254 : vector<16x128xf32>
    %256 = vector.broadcast %10 : vector<1x128xf32> to vector<16x128xf32>
    %257 = arith.addf %255, %256 : vector<16x128xf32>
    %258 = arith.addf %135, %257 : vector<16x128xf32>
    %cst_88 = arith.constant dense<0.000000e+00> : vector<16xf32>
    %259 = vector.multi_reduction <add>, %258, %cst_88 [1] : vector<16x128xf32> to vector<16xf32>
    %260 = vector.shape_cast %259 : vector<16xf32> to vector<16x1xf32>
    %cst_89 = arith.constant 1.280000e+02 : f32
    %261 = vector.broadcast %cst_89 : f32 to vector<16x1xf32>
    %262 = arith.divf %260, %261 : vector<16x1xf32>
    %263 = vector.broadcast %262 : vector<16x1xf32> to vector<16x128xf32>
    %264 = arith.subf %258, %263 : vector<16x128xf32>
    %265 = arith.mulf %264, %264 : vector<16x128xf32>
    %cst_90 = arith.constant dense<0.000000e+00> : vector<16xf32>
    %266 = vector.multi_reduction <add>, %265, %cst_90 [1] : vector<16x128xf32> to vector<16xf32>
    %267 = vector.shape_cast %266 : vector<16xf32> to vector<16x1xf32>
    %cst_91 = arith.constant 1.280000e+02 : f32
    %268 = vector.broadcast %cst_91 : f32 to vector<16x1xf32>
    %269 = arith.divf %267, %268 : vector<16x1xf32>
    %cst_92 = arith.constant 9.99999974E-6 : f32
    %270 = vector.broadcast %cst_92 : f32 to vector<16x1xf32>
    %271 = arith.addf %269, %270 : vector<16x1xf32>
    %272 = math.rsqrt %271 : vector<16x1xf32>
    %273 = vector.broadcast %272 : vector<16x1xf32> to vector<16x128xf32>
    %274 = arith.mulf %264, %273 : vector<16x128xf32>
    %275 = vector.broadcast %11 : vector<1x128xf32> to vector<16x128xf32>
    %276 = arith.mulf %274, %275 : vector<16x128xf32>
    %277 = vector.broadcast %12 : vector<1x128xf32> to vector<16x128xf32>
    %278 = arith.addf %276, %277 : vector<16x128xf32>
    %279 = arith.truncf %278 : vector<16x128xf32> to vector<16x128xbf16>
    %c128_93 = arith.constant 128 : index
    %c0_94 = arith.constant 0 : index
    %280 = vector.load %arg3[%c128_93, %c0_94] : memref<256x256xbf16, #tpu.memory_space<vmem>>, vector<128x256xbf16>
    %cst_95 = arith.constant dense<0.000000e+00> : vector<16x256xf32>
    %281 = tpu.matmul %279, %280, %cst_95 {dimension_numbers = #tpu.dot_dimension_numbers<[1], [0], [0], [1], [0, 0, 1, 1], [], []>} : vector<16x128xbf16>, vector<128x256xbf16>, vector<16x256xf32> -> vector<16x256xf32>
    %282 = vector.broadcast %13 : vector<1x256xf32> to vector<16x256xf32>
    %283 = arith.addf %281, %282 : vector<16x256xf32>
    %cst_96 = arith.constant 0.000000e+00 : f32
    %284 = vector.broadcast %cst_96 : f32 to vector<16x256xf32>
    %285 = arith.maximumf %283, %284 : vector<16x256xf32>
    %286 = arith.truncf %285 : vector<16x256xf32> to vector<16x256xbf16>
    %c384 = arith.constant 384 : index
    %c0_97 = arith.constant 0 : index
    %287 = vector.load %arg4[%c384, %c0_97] : memref<640x128xbf16, #tpu.memory_space<vmem>>, vector<256x128xbf16>
    %cst_98 = arith.constant dense<0.000000e+00> : vector<16x128xf32>
    %288 = tpu.matmul %286, %287, %cst_98 {dimension_numbers = #tpu.dot_dimension_numbers<[1], [0], [0], [1], [0, 0, 1, 1], [], []>} : vector<16x256xbf16>, vector<256x128xbf16>, vector<16x128xf32> -> vector<16x128xf32>
    %289 = vector.broadcast %14 : vector<1x128xf32> to vector<16x128xf32>
    %290 = arith.addf %288, %289 : vector<16x128xf32>
    %291 = arith.addf %258, %290 : vector<16x128xf32>
    %c0_99 = arith.constant 0 : index
    %c0_100 = arith.constant 0 : index
    %292 = vector.load %arg6[%c0_99, %c0_100] : memref<16x128xf32, #tpu.memory_space<vmem>>, vector<16x128xf32>
    tpu.vector_store %arg6[%c0_99, %c0_100], %291 {strides = array<i32>} : memref<16x128xf32, #tpu.memory_space<vmem>>, vector<16x128xf32>,
    return
  }
}

</mosaic_0001>

<bundles_post_ra>
// kernel: tpu_custom_call.1
= control target key start
LH: loop header
LB: loop body
LE: loop exit
PB: predicated region body
PF: predicated region fallthrough
CT: control target
= control target key end

     0   :  { %11 = vsyncpa [#allocation3], 0  ;;  %s3049_s0 = inlined_call_operand.hbm [shape: f32[16,128], index: 0, kind: input, shape index: {}]   ;;  %s3050_s1 = inlined_call_operand.hbm [shape: f32[32,128], index: 1, kind: input, shape index: {}]   ;;  %s3051_s2 = inlined_call_operand.hbm [shape: bf16[128,384], index: 2, kind: input, shape index: {}]   ;;  %s3052_s3 = inlined_call_operand.hbm [shape: bf16[256,256], index: 3, kind: input, shape index: {}]   ;;  %s3053_s4 = inlined_call_operand.hbm [shape: bf16[640,128], index: 4, kind: input, shape index: {}]   ;;  %s3054_s5 = inlined_call_operand.hbm [shape: f32[48,384], index: 5, kind: input, shape index: {}]   ;;  %s3055_s6 = inlined_call_operand.hbm [shape: f32[16,128], index: 6, kind: output, shape index: {}]  }
   0x1   :  { %12 = vsyncpa [#allocation6], 0 }
   0x2   :  { %13 = vsyncpa [#allocation9], 0 }
   0x3   :  { %14 = vsyncpa [#allocation12], 0 }
   0x4   :  { %15 = vsyncpa [#allocation4], 0  ;;  %s33_s23 = sshll.u32 %s3050_s1, 4  ;;  %s2708_s24 = smov [#allocation5]   ;;  %s34_s23 = int_to_ptr.hbm [resolvable:$true] %s33_s23 }
   0x5   :  { %s35_s25 = sshll.u32 %s2708_s24, 4  ;;  %s59_s28 = sshll.u32 %s3052_s3, 4  ;;  %s36_s25 = int_to_ptr.vmem [resolvable:$true] %s35_s25  ;;  %s60_s28 = int_to_ptr.hbm [resolvable:$true] %s59_s28 }
   0x6   :  { %s2709_s29 = smov 128   ;;  %s2710_s30 = smov 8  }
   0x7   :  { %41 = dma.hbm_to_vmem [thread:$0]  %s34_s23, 512, %s36_s25, [#allocation6], %s2709_s29, %s2709_s29, %s2710_s30  }
   0x8   :  { %s2711_s7 = smov [#allocation8]   ;;  %s20_s1 = sshll.u32 %s3049_s0, 4  ;;  %s21_s1 = int_to_ptr.hbm [resolvable:$true] %s20_s1 }
   0x9   :  { %s61_s8 = sshll.u32 %s2711_s7, 4  ;;  %s46_s12 = sshll.u32 %s3051_s2, 4  ;;  %s62_s8 = int_to_ptr.vmem [resolvable:$true] %s61_s8  ;;  %s47_s12 = int_to_ptr.hbm [resolvable:$true] %s46_s12 }
   0xa   :  { %67 = dma.hbm_to_vmem [thread:$0]  %s60_s28, 4096, %s62_s8, [#allocation9], %s2709_s29, %s2709_s29, %s2710_s30  }
   0xb   :  { %s2712_s13 = smov [#allocation2]   ;;  %s2713_s15 = smov [#allocation7]  }
   0xc   :  { %s22_s14 = sshll.u32 %s2712_s13, 4  ;;  %s48_s0 = sshll.u32 %s2713_s15, 4  ;;  %s23_s14 = int_to_ptr.vmem [resolvable:$true] %s22_s14  ;;  %s49_s0 = int_to_ptr.vmem [resolvable:$true] %s48_s0 }
   0xd   :  { %28 = dma.hbm_to_vmem [thread:$0]  %s21_s1, 256, %s23_s14, [#allocation3], %s2709_s29, %s2709_s29, %s2710_s30  }
   0xe   :  { %s2714_s16 = smov 192   ;;  %s2715_s17 = smov 12  }
   0xf   :  { %54 = dma.hbm_to_vmem [thread:$0]  %s47_s12, 3072, %s49_s0, [#allocation6], %s2714_s16, %s2714_s16, %s2715_s17  }
  0x10   :  { %s72_s20 = sshll.u32 %s3053_s4, 4  ;;  %s2716_s2 = smov [#allocation10]   ;;  %s73_s20 = int_to_ptr.hbm [resolvable:$true] %s72_s20 }
  0x11   :  { %s74_s21 = sshll.u32 %s2716_s2, 4  ;;  %s85_s24 = sshll.u32 %s3054_s5, 4  ;;  %s75_s21 = int_to_ptr.vmem [resolvable:$true] %s74_s21  ;;  %s86_s24 = int_to_ptr.hbm [resolvable:$true] %s85_s24 }
  0x12   :  { %s2717_s25 = smov 64   ;;  %s2718_s26 = smov 4  }
  0x13   :  { %80 = dma.hbm_to_vmem [thread:$0]  %s73_s20, 5120, %s75_s21, [#allocation9], %s2717_s25, %s2717_s25, %s2718_s26  }
  0x14   :  { %s2719_s27 = smov [#allocation11]   ;;  %s2720_s7 = smov 384  }
  0x15   :  { %s87_s28 = sshll.u32 %s2719_s27, 4  ;;  %s2721_s8 = smov 24   ;;  %s88_s28 = int_to_ptr.vmem [resolvable:$true] %s87_s28 }
  0x16   :  { %93 = dma.hbm_to_vmem [thread:$0]  %s86_s24, 2304, %s88_s28, [#allocation12], %s2720_s7, %s2720_s7, %s2721_s8  }
  0x17   :  { %2698 = dma.done.wait [#allocation3], 256  }
  0x18   :  { %2699 = vsyncadd [#allocation3], 4294967040 }
  0x19   :  { %2700 = dma.done.wait [#allocation6], 3584  }
  0x1a   :  { %2701 = vsyncadd [#allocation6], 4294963712 }
  0x1b   :  { %2702 = dma.done.wait [#allocation9], 9216  }
  0x1c   :  { %2703 = vsyncadd [#allocation9], 4294958080 }
  0x1d   :  { %2704 = dma.done.wait [#allocation12], 2304  }
  0x1e   :  { %2705 = vsyncadd [#allocation12], 4294964992  ;;  %v2790_v0 = vld [vmem:[#allocation2] sm:$0xff]  ;;  %v2793_v1 = vld [vmem:[#allocation2 + $0x8] sm:$0xff]  ;;  %v2722_v2 = vmov 128.0   ;;  %vm422_vm7 = vcmask 261120  }
  0x1f   :  { %145 = vadd.xlane.f32.xlu0 %v2790_v0  ;;  %2452 = vrcp.f32 %v2722_v2  ;;  %v2016_v17 = vld [vmem:[#allocation7 + $0xa8] sm:$0xf]  ;;  %v2360_v18 = vld [vmem:[#allocation7 + $0xb0] sm:$0xf0]  ;;  %v2359_v19 = vld [vmem:[#allocation7 + $0xac] sm:$0xf] }
  0x20   :  { %v2017_v20 = vor.u32 %v2360_v18, %v2016_v17  ;;  %v2018_v21 = vld [vmem:[#allocation7 + $0xb4] sm:$0xf0]  ;;  %v2024_v22 = vld [vmem:[#allocation7 + $0xb0] sm:$0xf]  ;;  %v2361_v23 = vld [vmem:[#allocation7 + $0xb8] sm:$0xf0] }
  0x21   :  { %v2021_v24 = vor.u32 %v2359_v19, %v2018_v21  ;;  %v2025_v25 = vor.u32 %v2361_v23, %v2024_v22  ;;  %v2004_v26 = vld [vmem:[#allocation7 + $0x90] sm:$0xf]  ;;  %v2357_v27 = vld [vmem:[#allocation7 + $0x98] sm:$0xf0]  ;;  %v2356_v28 = vld [vmem:[#allocation7 + $0x94] sm:$0xf] }
  0x22   :  { %364 = vmatpush.bf16.msra.mxu0 %v2017_v20  ;;  %v2005_v29 = vor.u32 %v2357_v27, %v2004_v26  ;;  %v2006_v30 = vld [vmem:[#allocation7 + $0x9c] sm:$0xf0]  ;;  %v2012_v31 = vld [vmem:[#allocation7 + $0x98] sm:$0xf]  ;;  %v2358_v32 = vld [vmem:[#allocation7 + $0xa0] sm:$0xf0] }
  0x23   :  { %378 = vmatpush.bf16.msra.mxu1 %v2021_v24  ;;  %392 = vmatpush.bf16.msra.mxu2 %v2025_v25  ;;  %v2009_v33 = vor.u32 %v2356_v28, %v2006_v30  ;;  %v2013_v34 = vor.u32 %v2358_v32, %v2012_v31  ;;  %v1992_v35 = vld [vmem:[#allocation7 + $0x78] sm:$0xf]  ;;  %v2354_v36 = vld [vmem:[#allocation7 + $0x80] sm:$0xf0]  ;;  %v2353_v37 = vld [vmem:[#allocation7 + $0x7c] sm:$0xf] }
  0x24   :  { %v1993_v38 = vor.u32 %v2354_v36, %v1992_v35  ;;  %v1994_v39 = vld [vmem:[#allocation7 + $0x84] sm:$0xf0]  ;;  %v2000_v40 = vld [vmem:[#allocation7 + $0x80] sm:$0xf]  ;;  %v2355_v41 = vld [vmem:[#allocation7 + $0x88] sm:$0xf0] }
  0x25   :  { %v2453_v3 = vpop.eup %2452  ;;  %v1997_v42 = vor.u32 %v2353_v37, %v1994_v39  ;;  %v2001_v43 = vor.u32 %v2355_v41, %v2000_v40  ;;  %v1980_v44 = vld [vmem:[#allocation7 + $0x60] sm:$0xf]  ;;  %v2351_v45 = vld [vmem:[#allocation7 + $0x68] sm:$0xf0]  ;;  %v2350_v46 = vld [vmem:[#allocation7 + $0x64] sm:$0xf] }
  0x26   :  { %v150_v4 = vmul.f32 128.0, %v2453_v3  ;;  %vm154_vm0 = vweird.f32 %v2453_v3  ;;  %365 = vmatpush.bf16.msra.mxu0 %v2005_v29  ;;  %v1981_v47 = vor.u32 %v2351_v45, %v1980_v44  ;;  %v1982_v48 = vld [vmem:[#allocation7 + $0x6c] sm:$0xf0]  ;;  %v1988_v49 = vld [vmem:[#allocation7 + $0x68] sm:$0xf]  ;;  %vm443_vm8 = vcmask 130048  }
  0x27   :  { %147 = vadd.xlane.f32.xlu0 %v2793_v1  ;;  %379 = vmatpush.bf16.msra.mxu1 %v2009_v33  ;;  %v2352_v50 = vld [vmem:[#allocation7 + $0x70] sm:$0xf0]  ;;  %v1985_v51 = vor.u32 %v2350_v46, %v1982_v48  ;;  %v1968_v53 = vld [vmem:[#allocation7 + $0x48] sm:$0xf]  ;;  %v2347_v55 = vld [vmem:[#allocation7 + $0x4c] sm:$0xf] }
  0x28   :  { %v151_v5 = vsub.f32 1.0, %v150_v4  ;;  %393 = vmatpush.bf16.msra.mxu2 %v2013_v34  ;;  %v1989_v52 = vor.u32 %v2352_v50, %v1988_v49  ;;  %v2348_v54 = vld [vmem:[#allocation7 + $0x50] sm:$0xf0]  ;;  %v1970_v57 = vld [vmem:[#allocation7 + $0x54] sm:$0xf0]  ;;  %s2723_s4 = smov 96  }
  0x29   :  { %v1969_v56 = vor.u32 %v2348_v54, %v1968_v53  ;;  %v1976_v58 = vld [vmem:[#allocation7 + $0x50] sm:$0xf]  ;;  %v2349_v59 = vld [vmem:[#allocation7 + $0x58] sm:$0xf0]  ;;  %v1973_v60 = vor.u32 %v2347_v55, %v1970_v57  ;;  %v2344_v2 = vld [vmem:[#allocation7 + $0x34] sm:$0xf] }
  0x2a   :  { %v152_v6 = vmul.f32 %v2453_v3, %v151_v5  ;;  %366 = vmatpush.bf16.msra.mxu0 %v1993_v38  ;;  %v1977_v61 = vor.u32 %v2349_v59, %v1976_v58  ;;  %v1956_v62 = vld [vmem:[#allocation7 + $0x30] sm:$0xf]  ;;  %v2345_v63 = vld [vmem:[#allocation7 + $0x38] sm:$0xf0]  ;;  %v1958_v4 = vld [vmem:[#allocation7 + $0x3c] sm:$0xf0] }
  0x2b   :  { %380 = vmatpush.bf16.msra.mxu1 %v1997_v42  ;;  %v1964_v5 = vld [vmem:[#allocation7 + $0x38] sm:$0xf]  ;;  %v1952_v17 = vld [vmem:[#allocation7 + $0x20] sm:$0xf]  ;;  %v2343_v18 = vld [vmem:[#allocation7 + $0x28] sm:$0xf0] }
  0x2c   :  { %v153_v7 = vadd.f32 %v2453_v3, %v152_v6  ;;  %394 = vmatpush.bf16.msra.mxu2 %v2001_v43  ;;  %v2346_v6 = vld [vmem:[#allocation7 + $0x40] sm:$0xf0]  ;;  %v1953_v20 = vor.u32 %v2343_v18, %v1952_v17  ;;  %v1932_v21 = vld [vmem:[#allocation7] sm:$0xf]  ;;  %v2339_v22 = vld [vmem:[#allocation7 + $0x8] sm:$0xf0] }
  0x2d   :  { %v2338_v23 = vld [vmem:[#allocation7 + $0x4] sm:$0xf]  ;;  %v1933_v25 = vor.u32 %v2339_v22, %v1932_v21  ;;  %v1934_v26 = vld [vmem:[#allocation7 + $0xc] sm:$0xf0]  ;;  %v1940_v27 = vld [vmem:[#allocation7 + $0x8] sm:$0xf] }
  0x2e   :  { %v2796_v8 = vsel %vm154_vm0, %v2453_v3, %v153_v7  ;;  %367 = vmatpush.bf16.msra.mxu0 %v1981_v47  ;;  %v1957_v3 = vor.u32 %v2345_v63, %v1956_v62  ;;  %v1961_v7 = vor.u32 %v2344_v2, %v1958_v4  ;;  %v2340_v28 = vld [vmem:[#allocation7 + $0x10] sm:$0xf0]  ;;  %v1937_v30 = vor.u32 %v2338_v23, %v1934_v26  ;;  %v125_v50 = vld [vmem:[#allocation11] ss:$0 sm:$0xff]  ;;  %v126_v54 = vld [vmem:[#allocation11 + $0x1] ss:$0 sm:$0xff] }
  0x2f   :  { %381 = vmatpush.bf16.msra.mxu1 %v1985_v51  ;;  %v1941_v31 = vor.u32 %v2340_v28, %v1940_v27  ;;  %v128_v59 = vld [vmem:[#allocation11 + $0x2] ss:$8 sm:$0x7]  ;;  %s2724_s5 = smov 32   ;;  %s2725_s9 = smov [#allocation13]  }
  0x30   :  { %395 = vmatpush.bf16.msra.mxu2 %v1989_v52  ;;  %v232_v2 = vperm.slane %v128_v59, 2  ;;  %s1912_s10 = sshll.u32 %s2725_s9, 4  ;;  %s1914_s11 = sshll.u32 %s3055_s6, 4  ;;  %s1913_s10 = int_to_ptr.vmem [resolvable:$true] %s1912_s10  ;;  %s1915_s11 = int_to_ptr.hbm [resolvable:$true] %s1914_s11 }
  0x32   :  { %368 = vmatpush.bf16.msra.mxu0 %v1969_v56 }
  0x33   :  { %382 = vmatpush.bf16.msra.mxu1 %v1973_v60 }
  0x34   :  { %396 = vmatpush.bf16.msra.mxu2 %v1977_v61 }
  0x36   :  { %369 = vmatpush.bf16.msra.mxu0 %v1957_v3 }
  0x37   :  { %383 = vmatpush.bf16.msra.mxu1 %v1961_v7 }
  0x92   :  { %v146_v9 = vpop.xlane.xlu0 %145 }
  0x93   :  { %v156_v10 = vmul.f32 %v2796_v8, %v146_v9  ;;  %v1965_v9 = vor.u32 %v2346_v6, %v1964_v5  ;;  %v230_v5 = vperm.slane %v128_v59, 0 }
  0x95   :  { %v2800_v11 = vsub.f32 %v2790_v0, %v156_v10  ;;  %397 = vmatpush.bf16.msra.mxu2 %v1965_v9  ;;  %v1944_v10 = vld [vmem:[#allocation7 + $0x18] sm:$0xf] }
  0x97   :  { %v160_v12 = vmul.f32 %v2800_v11, %v2800_v11 }
  0x99   :  { %162 = vadd.xlane.f32.xlu1 %v160_v12  ;;  %v2342_v12 = vld [vmem:[#allocation7 + $0x20] sm:$0xf0]  ;;  %398 = vmatpush.bf16.msra.mxu2 %v1953_v20 }
  0x9a   :  { %v148_v13 = vpop.xlane.xlu0 %147 }
  0x9b   :  { %v157_v14 = vmul.f32 %v2796_v8, %v148_v13  ;;  %v2341_v13 = vld [vmem:[#allocation7 + $0x1c] sm:$0xf] }
  0x9d   :  { %v2806_v15 = vsub.f32 %v2793_v1, %v157_v14  ;;  %v1945_v14 = vor.u32 %v2342_v12, %v1944_v10  ;;  %399 = vmatpush.bf16.msra.mxu2 %v1941_v31 }
  0x9f   :  { %v161_v16 = vmul.f32 %v2806_v15, %v2806_v15  ;;  %370 = vmatpush.bf16.msra.mxu0 %v1945_v14 }
  0xa1   :  { %164 = vadd.xlane.f32.xlu1 %v161_v16  ;;  %v1946_v16 = vld [vmem:[#allocation7 + $0x24] sm:$0xf0] }
  0xa2   :  { %v1949_v19 = vor.u32 %v2341_v13, %v1946_v16 }
  0xa3   :  { %371 = vmatpush.bf16.msra.mxu0 %v1933_v25 }
  0xa4   :  { %384 = vmatpush.bf16.msra.mxu1 %v1949_v19 }
  0xa8   :  { %385 = vmatpush.bf16.msra.mxu1 %v1937_v30  ;;  %v2819_v30 = vld [vmem:[#allocation11 + $0x30] sm:$0xff] }
 0x10c   :  { %v163_v24 = vpop.xlane.xlu1 %162 }
 0x10d   :  { %v166_v29 = vmul.f32 %v163_v24, %v2796_v8 }
 0x10f   :  { %v168_v32 = vadd.f32 1e-05, %v166_v29 }
 0x111   :  { %2454 = vrsqrt.f32 %v168_v32  ;;  %vm176_vm2 = vweird.f32 %v168_v32 }
 0x114   :  { %v165_v33 = vpop.xlane.xlu1 %164 }
 0x115   :  { %v167_v34 = vmul.f32 %v165_v33, %v2796_v8 }
 0x117   :  { %v2455_v35 = vpop.eup %2454  ;;  %v169_v36 = vadd.f32 1e-05, %v167_v34  ;;  %v2823_v34 = vld [vmem:[#allocation11 + $0x48] sm:$0xff] }
 0x118   :  { %v171_v37 = vmul.f32 %v2455_v35, %v168_v32  ;;  %vm177_vm1 = vweird.f32 %v2455_v35 }
 0x119   :  { %2456 = vrsqrt.f32 %v169_v36  ;;  %vm178_vm3 = vmor %vm176_vm2, %vm177_vm1  ;;  %vm186_vm5 = vweird.f32 %v169_v36 }
 0x11a   :  { %v172_v38 = vmul.f32 %v2455_v35, %v171_v37 }
 0x11c   :  { %v173_v39 = vmul.f32 0.5, %v172_v38 }
 0x11e   :  { %v174_v40 = vsub.f32 1.5, %v173_v39 }
 0x11f   :  { %v2457_v41 = vpop.eup %2456 }
 0x120   :  { %v175_v42 = vmul.f32 %v2455_v35, %v174_v40  ;;  %v181_v43 = vmul.f32 %v2457_v41, %v169_v36  ;;  %vm187_vm4 = vweird.f32 %v2457_v41 }
 0x121   :  { %vm188_vm6 = vmor %vm186_vm5, %vm187_vm4 }
 0x122   :  { %v182_v44 = vmul.f32 %v2457_v41, %v181_v43  ;;  %v179_v45 = vsel %vm178_vm3, %v2455_v35, %v175_v42 }
 0x123   :  { %v190_v48 = vmul.f32 %v179_v45, %v2800_v11  ;;  %v231_v11 = vperm.slane %v128_v59, 1 }
 0x124   :  { %v183_v46 = vmul.f32 0.5, %v182_v44 }
 0x125   :  { %v192_v53 = vmul.f32 %v190_v48, %v125_v50 }
 0x126   :  { %v184_v47 = vsub.f32 1.5, %v183_v46 }
 0x127   :  { %v194_v56 = vadd.f32 %v192_v53, %v126_v54 }
 0x128   :  { %v185_v49 = vmul.f32 %v2457_v41, %v184_v47 }
 0x12a   :  { %v189_v51 = vsel %vm188_vm6, %v2457_v41, %v185_v49 }
 0x12b   :  { %v191_v52 = vmul.f32 %v189_v51, %v2806_v15  ;;  %v2362_v51 = vld [vmem:[#allocation10] sm:$0xff] }
 0x12d   :  { %v193_v55 = vmul.f32 %v191_v52, %v125_v50  ;;  %v2363_v50 = vld [vmem:[#allocation10 + $0x8] sm:$0xff] }
 0x12e   :  { %617 = vmatpush.bf16.msrb.mxu2 %v2363_v50 }
 0x12f   :  { %v195_v57 = vadd.f32 %v193_v55, %v126_v54 }
 0x131   :  { %v196_v58 = vpack.c.bf16 %v195_v57, %v194_v56 }
 0x132   :  { %618 = vmatpush.bf16.msrb.mxu2 %v2362_v51 }
 0x133   :  { %372 = vmatmul.bf16.vlgmr.msra.gmra.mxu0 %v196_v58  ;;  %386 = vmatmul.bf16.vlgmr.msra.gmra.mxu1 %v196_v58 }
 0x134   :  { %400 = vmatmul.bf16.vlgmr.msra.gmra.mxu2 %v196_v58 }
 0x1b0   :  { %v373_v60 = vpop.f32.mrf.mxu0  ;;  %v387_v61 = vpop.f32.mrf.mxu1 }
 0x1b1   :  { %v388_v62 = vadd.f32 %v387_v61, %v231_v11  ;;  %v374_v12 = vadd.f32 %v373_v60, %v230_v5 }
 0x1b3   :  { %v408_v15 = vpack.c.bf16 %v388_v62, %v388_v62  ;;  %v406_v21 = vpack.c.bf16 %v374_v12, %v374_v12 }
 0x1b5   :  { %v419_v13 = vunpack.c.l.b16 %v408_v15  ;;  %v414_v27 = vunpack.c.l.b16 %v406_v21 }
 0x1b7   :  { %v401_v63 = vpop.f32.mrf.mxu2 }
 0x1b8   :  { %v375_v3 = vpop.f32.mrf.mxu0  ;;  %v389_v4 = vpop.f32.mrf.mxu1  ;;  %v402_v10 = vadd.f32 %v401_v63, %v232_v2 }
 0x1b9   :  { %v390_v6 = vadd.f32 %v389_v4, %v231_v11  ;;  %v376_v7 = vadd.f32 %v375_v3, %v230_v5 }
 0x1ba   :  { %v410_v19 = vpack.c.bf16 %v402_v10, %v402_v10 }
 0x1bb   :  { %v409_v9 = vpack.c.bf16 %v390_v6, %v390_v6  ;;  %v407_v16 = vpack.c.bf16 %v376_v7, %v376_v7 }
 0x1bc   :  { %v469_v25 = vunpack.c.l.b16 %v410_v19 }
 0x1bd   :  { %v420_v14 = vunpack.c.l.b16 %v409_v9  ;;  %v415_v24 = vunpack.c.l.b16 %v407_v16 }
 0x1bf   :  { %v421_v17 = vpack.c.b16 %v420_v14, %v419_v13  ;;  %v403_v18 = vpop.f32.mrf.mxu2  ;;  %v416_v29 = vpack.c.b16 %v415_v24, %v414_v27 }
 0x1c0   :  { %v404_v20 = vadd.f32 %v403_v18, %v232_v2 }
 0x1c1   :  { %v427_v22 = vsel %vm422_vm7, %v421_v17, 0 }
 0x1c2   :  { %v411_v23 = vpack.c.bf16 %v404_v20, %v404_v20  ;;  %436 = vmatpush.bf16.xpose.msra.mxu3 %v427_v22 }
 0x1c4   :  { %v470_v26 = vunpack.c.l.b16 %v411_v23 }
 0x1c6   :  { %v2815_v28 = vpack.c.b16 %v470_v26, %v469_v25 }
 0x1c9   :  { %2026 = vmatmul.msk.bf16.vlgmr.msra.gmra.mxu3 %vm422_vm7, %v416_v29 }
 0x1ca   :  { %483 = vmatpush.bf16.msrb.mxu3 %v2815_v28 }
 0x24c   :  { %v438_v31 = vpop.f32.mrf.mxu3 }
 0x24d   :  { %v439_v32 = vadd.f32 %v438_v31, %v2819_v30 }
 0x24f   :  { %v444_v33 = vsel %vm443_vm8, %v439_v32, -inf }
 0x250   :  { %445 = vmax.xlane.f32.xlu2 %v444_v33 }
 0x254   :  { %v440_v35 = vpop.f32.mrf.mxu3 }
 0x255   :  { %v441_v36 = vadd.f32 %v440_v35, %v2823_v34 }
 0x257   :  { %v447_v37 = vsel %vm443_vm8, %v441_v36, -inf }
 0x258   :  { %448 = vmax.xlane.f32.xlu2 %v447_v37 }
 0x270   :  { %497 = vrot.lane.b32.xlu2 %v421_v17, %s2723_s4 }
 0x278   :  { %627 = vrot.lane.b32.xlu2 %v421_v17, %s2717_s25 }
 0x280   :  { %625 = vrot.lane.b32.xlu2 %v416_v29, %s2717_s25 }
 0x2c3   :  { %v446_v38 = vpop.xlane.xlu2 %445 }
 0x2c4   :  { %v450_v39 = vsub.f32 %v439_v32, %v446_v38 }
 0x2c6   :  { %v452_v40 = vmul.f32 1.442695, %v450_v39 }
 0x2c8   :  { %2458 = vpow2.f32 %v452_v40 }
 0x2cb   :  { %v449_v41 = vpop.xlane.xlu2 %448 }
 0x2cc   :  { %v451_v42 = vsub.f32 %v441_v36, %v449_v41 }
 0x2ce   :  { %v2459_v43 = vpop.eup %2458  ;;  %v454_v44 = vmul.f32 1.442695, %v451_v42 }
 0x2cf   :  { %v456_v45 = vsel %vm443_vm8, %v2459_v43, 0.0 }
 0x2d0   :  { %2460 = vpow2.f32 %v454_v44  ;;  %457 = vadd.xlane.f32.xlu0 %v456_v45 }
 0x2d3   :  { %v498_v46 = vpop.permute.xlu2 %497 }
 0x2d4   :  { %v503_v47 = vsel %vm422_vm7, %v498_v46, 0 }
 0x2d5   :  { %512 = vmatpush.bf16.xpose.msra.mxu3 %v503_v47 }
 0x2d6   :  { %v2461_v48 = vpop.eup %2460 }
 0x2d7   :  { %v459_v49 = vsel %vm443_vm8, %v2461_v48, 0.0 }
 0x2d8   :  { %460 = vadd.xlane.f32.xlu1 %v459_v49 }
 0x2db   :  { %v628_v58 = vpop.permute.xlu2 %627 }
 0x2dc   :  { %v633_v60 = vsel %vm422_vm7, %v628_v58, 0 }
 0x2e3   :  { %v626_v63 = vpop.permute.xlu2 %625 }
 0x2e4   :  { %495 = vrot.lane.b32.xlu0 %v416_v29, %s2723_s4 }
 0x2ec   :  { %728 = vrot.lane.b32.xlu0 %v416_v29, %s2724_s5 }
 0x2f1   :  { %730 = vrot.lane.b32.xlu1 %v421_v17, %s2724_s5 }
 0x343   :  { %v458_v52 = vpop.xlane.xlu0 %457 }
 0x344   :  { %2462 = vrcp.f32 %v458_v52 }
 0x34a   :  { %v2463_v54 = vpop.eup %2462 }
 0x34b   :  { %v461_v53 = vpop.xlane.xlu1 %460  ;;  %v464_v56 = vmul.f32 %v2463_v54, %v2459_v43 }
 0x34c   :  { %2464 = vrcp.f32 %v461_v53 }
 0x352   :  { %v2465_v55 = vpop.eup %2464 }
 0x353   :  { %v465_v57 = vmul.f32 %v2465_v55, %v2461_v48 }
 0x355   :  { %v466_v59 = vpack.c.bf16 %v465_v57, %v464_v56 }
 0x356   :  { %v496_v62 = vpop.permute.xlu0 %495 }
 0x357   :  { %2027 = vmatmul.msk.bf16.vlgmr.msrb.gmra.mxu3 %vm443_vm8, %v466_v59 }
 0x358   :  { %642 = vmatpush.bf16.xpose.msrb.mxu3 %v633_v60 }
 0x35e   :  { %v729_v10 = vpop.permute.xlu0 %728 }
 0x363   :  { %v731_v61 = vpop.permute.xlu1 %730 }
 0x364   :  { %v736_v11 = vsel %vm422_vm7, %v731_v61, 0 }
 0x365   :  { %745 = vmatpush.bf16.xpose.msra.mxu2 %v736_v11 }
 0x367   :  { %2028 = vmatmul.msk.bf16.vlgmr.msra.gmra.mxu3 %vm422_vm7, %v496_v62 }
 0x377   :  { %2048 = vmatmul.msk.bf16.vlgmr.msrb.gmra.mxu3 %vm422_vm7, %v626_v63 }
 0x3da   :  { %v485_v2 = vpop.f32.mrf.mxu3 }
 0x3e2   :  { %v487_v3 = vpop.f32.mrf.mxu3 }
 0x3e3   :  { %v490_v4 = vpack.c.bf16 %v487_v3, %v485_v2 }
 0x3e5   :  { %2047 = vmatmul.msk.bf16.vlgmr.msrb.gmra.mxu2 %vm422_vm7, %v490_v4  ;;  %v2365_v4 = vld [vmem:[#allocation10 + $0x18] sm:$0xff] }
 0x3e6   :  { %588 = vmatpush.bf16.msrb.mxu1 %v2365_v4  ;;  %v2120_v4 = vld [vmem:[#allocation8 + $0x20] sm:$0xf] }
 0x3ea   :  { %v514_v5 = vpop.f32.mrf.mxu3 }
 0x3eb   :  { %v515_v15 = vadd.f32 %v514_v5, %v2819_v30  ;;  %v2364_v5 = vld [vmem:[#allocation10 + $0x10] sm:$0xff] }
 0x3ec   :  { %589 = vmatpush.bf16.msrb.mxu1 %v2364_v5  ;;  %v2383_v5 = vld [vmem:[#allocation8 + $0x24] sm:$0xf0] }
 0x3ed   :  { %v519_v6 = vsel %vm443_vm8, %v515_v15, -inf }
 0x3ee   :  { %520 = vmax.xlane.f32.xlu1 %v519_v6 }
 0x3f2   :  { %v516_v7 = vpop.f32.mrf.mxu3 }
 0x3f3   :  { %v517_v9 = vadd.f32 %v516_v7, %v2823_v34 }
 0x3f5   :  { %2059 = vmatmul.msk.bf16.vlgmr.msra.gmra.mxu2 %vm422_vm7, %v729_v10  ;;  %v522_v12 = vsel %vm443_vm8, %v517_v9, -inf }
 0x3f6   :  { %523 = vmax.xlane.f32.xlu0 %v522_v12 }
 0x3fa   :  { %v644_v13 = vpop.f32.mrf.mxu3 }
 0x3fb   :  { %v645_v14 = vadd.f32 %v644_v13, %v2819_v30 }
 0x3fd   :  { %v649_v16 = vsel %vm443_vm8, %v645_v14, -inf }
 0x3fe   :  { %650 = vmax.xlane.f32.xlu0 %v649_v16 }
 0x402   :  { %v646_v31 = vpop.f32.mrf.mxu3 }
 0x403   :  { %v647_v33 = vadd.f32 %v646_v31, %v2823_v34  ;;  %v2368_v31 = vld [vmem:[#allocation10 + $0x30] sm:$0xff] }
 0x405   :  { %v652_v40 = vsel %vm443_vm8, %v647_v33, -inf }
 0x461   :  { %v521_v24 = vpop.xlane.xlu1 %520 }
 0x462   :  { %v525_v27 = vsub.f32 %v515_v15, %v521_v24 }
 0x464   :  { %v527_v32 = vmul.f32 1.442695, %v525_v27 }
 0x468   :  { %v2849_v17 = vpop.f32.mrf.mxu2 }
 0x469   :  { %v524_v18 = vpop.xlane.xlu0 %523 }
 0x46a   :  { %v526_v19 = vsub.f32 %v517_v9, %v524_v18 }
 0x46c   :  { %v529_v20 = vmul.f32 1.442695, %v526_v19 }
 0x46e   :  { %2466 = vpow2.f32 %v529_v20 }
 0x46f   :  { %2468 = vpow2.f32 %v527_v32  ;;  %v2367_v32 = vld [vmem:[#allocation10 + $0x28] sm:$0xff] }
 0x470   :  { %v2851_v21 = vpop.f32.mrf.mxu2  ;;  %718 = vmatpush.bf16.msra.mxu1 %v2367_v32  ;;  %v2377_v32 = vld [vmem:[#allocation10 + $0x78] sm:$0xff] }
 0x471   :  { %v651_v35 = vpop.xlane.xlu0 %650 }
 0x472   :  { %v655_v38 = vsub.f32 %v645_v14, %v651_v35 }
 0x474   :  { %v2467_v22 = vpop.eup %2466 }
 0x475   :  { %v534_v23 = vsel %vm443_vm8, %v2467_v22, 0.0  ;;  %v2469_v41 = vpop.eup %2468 }
 0x476   :  { %535 = vadd.xlane.f32.xlu0 %v534_v23  ;;  %v531_v42 = vsel %vm443_vm8, %v2469_v41, 0.0 }
 0x478   :  { %v747_v25 = vpop.f32.mrf.mxu2 }
 0x479   :  { %v748_v26 = vadd.f32 %v747_v25, %v2819_v30  ;;  %v657_v30 = vmul.f32 1.442695, %v655_v38 }
 0x47b   :  { %v752_v29 = vsel %vm443_vm8, %v748_v26, -inf  ;;  %2470 = vpow2.f32 %v657_v30 }
 0x47c   :  { %753 = vmax.xlane.f32.xlu2 %v752_v29  ;;  %v2369_v29 = vld [vmem:[#allocation10 + $0x38] sm:$0xff] }
 0x480   :  { %v749_v36 = vpop.f32.mrf.mxu2 }
 0x481   :  { %v750_v37 = vadd.f32 %v749_v36, %v2823_v34  ;;  %v2861_v43 = vpop.eup %2470 }
 0x482   :  { %v661_v44 = vsel %vm443_vm8, %v2861_v43, 0.0 }
 0x483   :  { %v755_v39 = vsel %vm443_vm8, %v750_v37, -inf }
 0x484   :  { %756 = vmax.xlane.f32.xlu1 %v755_v39  ;;  %653 = vmax.xlane.f32.xlu2 %v652_v40 }
 0x48c   :  { %532 = vadd.xlane.f32.xlu1 %v531_v42 }
 0x494   :  { %662 = vadd.xlane.f32.xlu1 %v661_v44 }
 0x49c   :  { %542 = vrot.lane.b32.xlu2 %v2815_v28, %s2723_s4 }
 0x4e9   :  { %v536_v52 = vpop.xlane.xlu0 %535 }
 0x4ef   :  { %v754_v34 = vpop.xlane.xlu2 %753 }
 0x4f0   :  { %v758_v45 = vsub.f32 %v748_v26, %v754_v34 }
 0x4f2   :  { %v760_v46 = vmul.f32 1.442695, %v758_v45  ;;  %v129_v45 = vld [vmem:[#allocation11 + $0x3] ss:$0 sm:$0xff] }
 0x4f4   :  { %2472 = vpow2.f32 %v760_v46 }
 0x4f7   :  { %v757_v47 = vpop.xlane.xlu1 %756  ;;  %v654_v48 = vpop.xlane.xlu2 %653 }
 0x4f8   :  { %v656_v49 = vsub.f32 %v647_v33, %v654_v48  ;;  %v759_v53 = vsub.f32 %v750_v37, %v757_v47  ;;  %v2366_v33 = vld [vmem:[#allocation10 + $0x20] sm:$0xff] }
 0x4f9   :  { %719 = vmatpush.bf16.msra.mxu1 %v2366_v33  ;;  %v2376_v33 = vld [vmem:[#allocation10 + $0x70] sm:$0xff] }
 0x4fa   :  { %v2473_v50 = vpop.eup %2472  ;;  %v659_v51 = vmul.f32 1.442695, %v656_v49  ;;  %v762_v55 = vmul.f32 1.442695, %v759_v53 }
 0x4fb   :  { %v764_v54 = vsel %vm443_vm8, %v2473_v50, 0.0 }
 0x4fc   :  { %765 = vadd.xlane.f32.xlu1 %v764_v54  ;;  %2474 = vpow2.f32 %v659_v51 }
 0x4fd   :  { %2476 = vrcp.f32 %v536_v52 }
 0x4ff   :  { %v533_v56 = vpop.xlane.xlu1 %532  ;;  %v543_v57 = vpop.permute.xlu2 %542 }
 0x500   :  { %2478 = vrcp.f32 %v533_v56  ;;  %555 = vmatpush.bf16.msrb.mxu0 %v543_v57  ;;  %v2393_v56 = vld [vmem:[#allocation8 + $0x74] sm:$0xf0]  ;;  %v2152_v57 = vld [vmem:[#allocation8 + $0x60] sm:$0xf] }
 0x501   :  { %2480 = vpow2.f32 %v762_v55  ;;  %v2160_v55 = vld [vmem:[#allocation8 + $0x70] sm:$0xf] }
 0x502   :  { %v2475_v58 = vpop.eup %2474 }
 0x503   :  { %v2477_v59 = vpop.eup %2476  ;;  %v664_v60 = vsel %vm443_vm8, %v2475_v58, 0.0 }
 0x504   :  { %665 = vadd.xlane.f32.xlu0 %v664_v60  ;;  %v540_v11 = vmul.f32 %v2477_v59, %v2467_v22  ;;  %v2144_v59 = vld [vmem:[#allocation8 + $0x50] sm:$0xf]  ;;  %v2389_v60 = vld [vmem:[#allocation8 + $0x54] sm:$0xf0] }
 0x506   :  { %v2479_v61 = vpop.eup %2478 }
 0x507   :  { %v539_v62 = vmul.f32 %v2479_v61, %v2469_v41  ;;  %v2481_v63 = vpop.eup %2480  ;;  %v663_v15 = vpop.xlane.xlu1 %662  ;;  %v2145_v61 = vor.u32 %v2389_v60, %v2144_v59  ;;  %v130_v59 = vld [vmem:[#allocation11 + $0x4] ss:$0 sm:$0xff] }
 0x508   :  { %v767_v3 = vsel %vm443_vm8, %v2481_v63, 0.0 }
 0x509   :  { %v541_v2 = vpack.c.bf16 %v540_v11, %v539_v62  ;;  %v2136_v11 = vld [vmem:[#allocation8 + $0x40] sm:$0xf]  ;;  %v2387_v62 = vld [vmem:[#allocation8 + $0x44] sm:$0xf0] }
 0x50b   :  { %2029 = vmatmul.msk.bf16.vlgmr.msrb.gmra.mxu0 %vm443_vm8, %v541_v2  ;;  %v2128_v2 = vld [vmem:[#allocation8 + $0x30] sm:$0xf] }
 0x50c   :  { %768 = vadd.xlane.f32.xlu0 %v767_v3 }
 0x515   :  { %775 = vrot.lane.b32.xlu1 %v2815_v28, %s2724_s5 }
 0x520   :  { %672 = vrot.lane.b32.xlu0 %v2815_v28, %s2717_s25 }
 0x56f   :  { %v766_v7 = vpop.xlane.xlu1 %765 }
 0x570   :  { %2482 = vrcp.f32 %v766_v7  ;;  %v2121_v7 = vor.u32 %v2383_v5, %v2120_v4  ;;  %v2908_v5 = vld [vmem:[#allocation11 + $0x7] ss:$8 sm:$0x3] }
 0x576   :  { %v2483_v10 = vpop.eup %2482 }
 0x577   :  { %v666_v6 = vpop.xlane.xlu0 %665  ;;  %v772_v14 = vmul.f32 %v2483_v10, %v2473_v50  ;;  %v2112_v10 = vld [vmem:[#allocation8 + $0x10] sm:$0xf] }
 0x57f   :  { %v769_v9 = vpop.xlane.xlu0 %768 }
 0x580   :  { %2484 = vrcp.f32 %v769_v9 }
 0x581   :  { %2486 = vrcp.f32 %v666_v6 }
 0x582   :  { %2488 = vrcp.f32 %v663_v15 }
 0x586   :  { %v2485_v12 = vpop.eup %2484 }
 0x587   :  { %v776_v13 = vpop.permute.xlu1 %775  ;;  %v773_v16 = vmul.f32 %v2485_v12, %v2481_v63  ;;  %v2487_v19 = vpop.eup %2486  ;;  %v2137_v63 = vor.u32 %v2387_v62, %v2136_v11  ;;  %v2381_v12 = vld [vmem:[#allocation8 + $0x14] sm:$0xf0]  ;;  %v131_v62 = vld [vmem:[#allocation11 + $0x5] ss:$0 sm:$0xff] }
 0x588   :  { %v557_v18 = vpop.f32.mrf.mxu0  ;;  %788 = vmatpush.bf16.msra.mxu3 %v776_v13  ;;  %v2489_v20 = vpop.eup %2488  ;;  %v670_v23 = vmul.f32 %v2487_v19, %v2475_v58  ;;  %v2161_v58 = vor.u32 %v2393_v56, %v2160_v55 }
 0x589   :  { %v774_v28 = vpack.c.bf16 %v773_v16, %v772_v14  ;;  %v669_v25 = vmul.f32 %v2489_v20, %v2861_v43  ;;  %v2113_v14 = vor.u32 %v2381_v12, %v2112_v10  ;;  %v2104_v16 = vld [vmem:[#allocation8] sm:$0xf] }
 0x58a   :  { %1061 = vmatpush.bf16.msrb.mxu2 %v2161_v58 }
 0x58b   :  { %2060 = vmatmul.msk.bf16.vlgmr.msra.gmra.mxu3 %vm443_vm8, %v774_v28  ;;  %v671_v27 = vpack.c.bf16 %v670_v23, %v669_v25  ;;  %v122_v23 = vld [vmem:[#allocation5 + $0x8] sm:$0xff] }
 0x590   :  { %v559_v22 = vpop.f32.mrf.mxu0 }
 0x591   :  { %v562_v24 = vpack.c.bf16 %v559_v22, %v557_v18  ;;  %v2379_v18 = vld [vmem:[#allocation8 + $0x4] sm:$0xf0]  ;;  %v121_v22 = vld [vmem:[#allocation5] sm:$0xff] }
 0x592   :  { %v673_v26 = vpop.permute.xlu0 %672  ;;  %v2105_v20 = vor.u32 %v2379_v18, %v2104_v16 }
 0x593   :  { %2038 = vmatmul.msk.bf16.vlgmr.msrb.gmra.mxu1 %vm422_vm7, %v562_v24  ;;  %685 = vmatpush.bf16.msra.mxu0 %v673_v26  ;;  %v2899_v26 = vpack.c.bf16 %v122_v23, %v121_v22 }
 0x594   :  { %944 = vmatpush.bf16.msrb.mxu1 %v2377_v32 }
 0x596   :  { %2049 = vmatmul.msk.bf16.vlgmr.msra.gmra.mxu0 %vm443_vm8, %v671_v27  ;;  %v123_v27 = vld [vmem:[#allocation5 + $0x10] sm:$0xff] }
 0x597   :  { %821 = vmatpush.bf16.msrb.mxu0 %v2369_v29  ;;  %v124_v29 = vld [vmem:[#allocation5 + $0x18] sm:$0xff] }
 0x598   :  { %945 = vmatpush.bf16.msrb.mxu1 %v2376_v33  ;;  %v132_v33 = vld [vmem:[#allocation11 + $0x6] ss:$0 sm:$0xff] }
 0x59b   :  { %822 = vmatpush.bf16.msrb.mxu0 %v2368_v31  ;;  %v2902_v31 = vpack.c.bf16 %v124_v29, %v123_v27 }
 0x60e   :  { %v790_v35 = vpop.f32.mrf.mxu3 }
 0x610   :  { %v591_v30 = vpop.f32.mrf.mxu1 }
 0x611   :  { %v621_v42 = vadd.f32 %v2849_v17, %v591_v30  ;;  %v2370_v30 = vld [vmem:[#allocation10 + $0x40] sm:$0xff] }
 0x613   :  { %v687_v36 = vpop.f32.mrf.mxu0 }
 0x616   :  { %v792_v37 = vpop.f32.mrf.mxu3 }
 0x617   :  { %v795_v38 = vpack.c.bf16 %v792_v37, %v790_v35  ;;  %v2375_v35 = vld [vmem:[#allocation10 + $0x68] sm:$0xff]  ;;  %v2373_v37 = vld [vmem:[#allocation10 + $0x58] sm:$0xff] }
 0x618   :  { %v593_v41 = vpop.f32.mrf.mxu1  ;;  %946 = vmatpush.bf16.msrb.mxu1 %v2375_v35 }
 0x619   :  { %2069 = vmatmul.msk.bf16.vlgmr.msrb.gmra.mxu0 %vm422_vm7, %v795_v38  ;;  %v623_v48 = vadd.f32 %v2851_v21, %v593_v41  ;;  %v2391_v21 = vld [vmem:[#allocation8 + $0x64] sm:$0xf0]  ;;  %v2372_v38 = vld [vmem:[#allocation10 + $0x50] sm:$0xff] }
 0x61b   :  { %v689_v39 = vpop.f32.mrf.mxu0 }
 0x61c   :  { %v692_v40 = vpack.c.bf16 %v689_v39, %v687_v36  ;;  %v2374_v36 = vld [vmem:[#allocation10 + $0x60] sm:$0xff]  ;;  %v2371_v39 = vld [vmem:[#allocation10 + $0x48] sm:$0xff] }
 0x61d   :  { %947 = vmatpush.bf16.msrb.mxu1 %v2374_v36 }
 0x61e   :  { %2058 = vmatmul.msk.bf16.vlgmr.msra.gmra.mxu1 %vm422_vm7, %v692_v40 }
 0x621   :  { %948 = vmatpush.bf16.msrb.mxu1 %v2373_v37 }
 0x625   :  { %949 = vmatpush.bf16.msrb.mxu1 %v2372_v38 }
 0x629   :  { %950 = vmatpush.bf16.msrb.mxu1 %v2371_v39 }
 0x62d   :  { %951 = vmatpush.bf16.msrb.mxu1 %v2370_v30 }
 0x696   :  { %v824_v43 = vpop.f32.mrf.mxu0 }
 0x69b   :  { %v721_v44 = vpop.f32.mrf.mxu1 }
 0x69c   :  { %v726_v34 = vadd.f32 %v721_v44, %v621_v42 }
 0x69e   :  { %v829_v46 = vadd.f32 %v824_v43, %v726_v34  ;;  %v826_v52 = vpop.f32.mrf.mxu0 }
 0x6a0   :  { %v831_v47 = vadd.f32 %v829_v46, %v129_v45 }
 0x6a2   :  { %v2884_v49 = vadd.f32 %v831_v47, %v2790_v0  ;;  %v2153_v0 = vor.u32 %v2391_v21, %v2152_v57 }
 0x6a3   :  { %v723_v50 = vpop.f32.mrf.mxu1 }
 0x6a4   :  { %v727_v51 = vadd.f32 %v723_v50, %v623_v48  ;;  %835 = vadd.xlane.f32.xlu2 %v2884_v49  ;;  %1062 = vmatpush.bf16.msrb.mxu2 %v2153_v0 }
 0x6a6   :  { %v830_v53 = vadd.f32 %v826_v52, %v727_v51 }
 0x6a8   :  { %v832_v54 = vadd.f32 %v830_v53, %v129_v45  ;;  %1063 = vmatpush.bf16.msrb.mxu2 %v2145_v61 }
 0x6aa   :  { %v2888_v17 = vadd.f32 %v832_v54, %v2793_v1  ;;  %v2385_v1 = vld [vmem:[#allocation8 + $0x34] sm:$0xf0] }
 0x6ab   :  { %v2129_v3 = vor.u32 %v2385_v1, %v2128_v2 }
 0x6ac   :  { %837 = vadd.xlane.f32.xlu0 %v2888_v17  ;;  %1064 = vmatpush.bf16.msrb.mxu2 %v2137_v63 }
 0x6b0   :  { %1065 = vmatpush.bf16.msrb.mxu2 %v2129_v3 }
 0x6b4   :  { %1066 = vmatpush.bf16.msrb.mxu2 %v2121_v7 }
 0x6b8   :  { %1067 = vmatpush.bf16.msrb.mxu2 %v2113_v14 }
 0x6bc   :  { %1068 = vmatpush.bf16.msrb.mxu2 %v2105_v20 }
 0x6bf   :  { %1069 = vmatmul.bf16.vlgmr.msrb.gmra.mxu2 %v2899_v26 }
 0x6cf   :  { %1074 = vmatmul.bf16.gmra.mxu2 %v2902_v31 }
 0x717   :  { %v836_v15 = vpop.xlane.xlu2 %835 }
 0x718   :  { %v839_v6 = vmul.f32 %v836_v15, %v2796_v8  ;;  %v977_v15 = vperm.slane %v2908_v5, 0 }
 0x71a   :  { %v2893_v9 = vsub.f32 %v2884_v49, %v839_v6 }
 0x71c   :  { %v843_v13 = vmul.f32 %v2893_v9, %v2893_v9 }
 0x71e   :  { %845 = vadd.xlane.f32.xlu1 %v843_v13 }
 0x71f   :  { %v838_v28 = vpop.xlane.xlu0 %837 }
 0x720   :  { %v840_v19 = vmul.f32 %v838_v28, %v2796_v8 }
 0x722   :  { %v842_v24 = vsub.f32 %v2888_v17, %v840_v19 }
 0x724   :  { %v844_v25 = vmul.f32 %v842_v24, %v842_v24 }
 0x726   :  { %847 = vadd.xlane.f32.xlu2 %v844_v25 }
 0x742   :  { %v1070_v58 = vpop.f32.mrf.mxu2 }
 0x74a   :  { %v1072_v2 = vpop.f32.mrf.mxu2 }
 0x74b   :  { %v1073_v10 = vadd.f32 %v1072_v2, %v977_v15 }
 0x74d   :  { %v1102_v18 = vpack.c.bf16 %v1073_v10, %v1073_v10 }
 0x74f   :  { %v1119_v23 = vunpack.c.l.b16 %v1102_v18 }
 0x752   :  { %v1075_v6 = vpop.f32.mrf.mxu2 }
 0x753   :  { %v1076_v7 = vadd.f32 %v1075_v6, %v977_v15  ;;  %v2106_v6 = vld [vmem:[#allocation8 + $0x8] sm:$0xf0] }
 0x755   :  { %v1103_v12 = vpack.c.bf16 %v1076_v7, %v1076_v7 }
 0x757   :  { %v1120_v28 = vunpack.c.l.b16 %v1103_v12 }
 0x75a   :  { %v1077_v13 = vpop.f32.mrf.mxu2 }
 0x75b   :  { %v1078_v14 = vadd.f32 %v1077_v13, %v977_v15 }
 0x75d   :  { %v1104_v19 = vpack.c.bf16 %v1078_v14, %v1078_v14 }
 0x75f   :  { %v1121_v20 = vunpack.c.l.b16 %v1104_v19 }
 0x791   :  { %v846_v40 = vpop.xlane.xlu1 %845 }
 0x792   :  { %v849_v41 = vmul.f32 %v846_v40, %v2796_v8 }
 0x794   :  { %v851_v42 = vadd.f32 1e-05, %v849_v41 }
 0x796   :  { %2490 = vrsqrt.f32 %v851_v42  ;;  %vm859_vm10 = vweird.f32 %v851_v42 }
 0x799   :  { %v848_v43 = vpop.xlane.xlu2 %847 }
 0x79a   :  { %v850_v44 = vmul.f32 %v848_v43, %v2796_v8 }
 0x79c   :  { %v2491_v34 = vpop.eup %2490  ;;  %v852_v45 = vadd.f32 1e-05, %v850_v44 }
 0x79d   :  { %v854_v46 = vmul.f32 %v2491_v34, %v851_v42  ;;  %vm860_vm9 = vweird.f32 %v2491_v34  ;;  %v2923_v42 = vld [vmem:[#allocation11 + $0x60] sm:$0xff] }
 0x79e   :  { %2492 = vrsqrt.f32 %v852_v45  ;;  %vm861_vm11 = vmor %vm859_vm10, %vm860_vm9  ;;  %vm869_vm13 = vweird.f32 %v852_v45 }
 0x79f   :  { %v855_v47 = vmul.f32 %v2491_v34, %v854_v46 }
 0x7a1   :  { %v856_v48 = vmul.f32 0.5, %v855_v47 }
 0x7a3   :  { %v857_v50 = vsub.f32 1.5, %v856_v48  ;;  %v2927_v48 = vld [vmem:[#allocation11 + $0x78] sm:$0xff] }
 0x7a4   :  { %v2493_v51 = vpop.eup %2492 }
 0x7a5   :  { %v858_v52 = vmul.f32 %v2491_v34, %v857_v50  ;;  %v864_v53 = vmul.f32 %v2493_v51, %v852_v45  ;;  %vm870_vm12 = vweird.f32 %v2493_v51  ;;  %v2162_v45 = vld [vmem:[#allocation8 + $0x78] sm:$0xf0]  ;;  %v2390_v50 = vld [vmem:[#allocation8 + $0x64] sm:$0xf] }
 0x7a6   :  { %vm871_vm14 = vmor %vm869_vm13, %vm870_vm12 }
 0x7a7   :  { %v865_v54 = vmul.f32 %v2493_v51, %v864_v53  ;;  %v862_v55 = vsel %vm861_vm11, %v2491_v34, %v858_v52  ;;  %v2392_v34 = vld [vmem:[#allocation8 + $0x74] sm:$0xf] }
 0x7a8   :  { %v873_v21 = vmul.f32 %v862_v55, %v2893_v9  ;;  %v1071_v9 = vadd.f32 %v1070_v58, %v977_v15  ;;  %v2165_v47 = vor.u32 %v2392_v34, %v2162_v45  ;;  %v2388_v55 = vld [vmem:[#allocation8 + $0x54] sm:$0xf]  ;;  %v2378_v15 = vld [vmem:[#allocation8 + $0x4] sm:$0xf] }
 0x7a9   :  { %v866_v56 = vmul.f32 0.5, %v865_v54  ;;  %v2109_v7 = vor.u32 %v2378_v15, %v2106_v6 }
 0x7aa   :  { %v875_v11 = vmul.f32 %v873_v21, %v130_v59  ;;  %v1101_v16 = vpack.c.bf16 %v1071_v9, %v1071_v9  ;;  %1080 = vmatpush.bf16.msrb.mxu3 %v2165_v47  ;;  %v2386_v21 = vld [vmem:[#allocation8 + $0x44] sm:$0xf] }
 0x7ab   :  { %v867_v57 = vsub.f32 1.5, %v866_v56  ;;  %v2146_v56 = vld [vmem:[#allocation8 + $0x58] sm:$0xf0] }
 0x7ac   :  { %v877_v1 = vadd.f32 %v875_v11, %v131_v62  ;;  %v1118_v22 = vunpack.c.l.b16 %v1101_v16  ;;  %v2149_v58 = vor.u32 %v2388_v55, %v2146_v56 }
 0x7ad   :  { %v868_v0 = vmul.f32 %v2493_v51, %v867_v57 }
 0x7ae   :  { %v2915_v27 = vpack.c.b16 %v1119_v23, %v1118_v22 }
 0x7af   :  { %v872_v60 = vsel %vm871_vm14, %v2493_v51, %v868_v0  ;;  %v2154_v51 = vld [vmem:[#allocation8 + $0x68] sm:$0xf0] }
 0x7b0   :  { %v874_v61 = vmul.f32 %v872_v60, %v842_v24  ;;  %v2911_v24 = vpack.c.b16 %v1121_v20, %v1120_v28  ;;  %v1128_v29 = vsel %vm422_vm7, %v2915_v27, 0  ;;  %v2157_v52 = vor.u32 %v2390_v50, %v2154_v51  ;;  %v2138_v0 = vld [vmem:[#allocation8 + $0x48] sm:$0xf0]  ;;  %v2384_v60 = vld [vmem:[#allocation8 + $0x34] sm:$0xf] }
 0x7b2   :  { %v876_v63 = vmul.f32 %v874_v61, %v130_v59  ;;  %v1131_v25 = vsel %vm422_vm7, %v2911_v24, 0  ;;  %1081 = vmatpush.bf16.msrb.mxu3 %v2157_v52  ;;  %v2141_v59 = vor.u32 %v2386_v21, %v2138_v0  ;;  %v2130_v61 = vld [vmem:[#allocation8 + $0x38] sm:$0xf0] }
 0x7b3   :  { %1139 = vmatpush.bf16.xpose.msra.mxu0 %v1131_v25  ;;  %v2133_v11 = vor.u32 %v2384_v60, %v2130_v61  ;;  %v978_v25 = vperm.slane %v2908_v5, 1  ;;  %v2395_v5 = vld [vmem:[#allocation10 + $0x88] sm:$0xff] }
 0x7b4   :  { %v878_v3 = vadd.f32 %v876_v63, %v131_v62  ;;  %v2382_v62 = vld [vmem:[#allocation8 + $0x24] sm:$0xf]  ;;  %v2122_v63 = vld [vmem:[#allocation8 + $0x28] sm:$0xf0]  ;;  %1334 = vmatpush.bf16.msra.mxu2 %v2395_v5 }
 0x7b5   :  { %v2125_v2 = vor.u32 %v2382_v62, %v2122_v63 }
 0x7b6   :  { %v879_v4 = vpack.c.bf16 %v878_v3, %v877_v1  ;;  %1082 = vmatpush.bf16.msrb.mxu3 %v2149_v58  ;;  %v2380_v1 = vld [vmem:[#allocation8 + $0x14] sm:$0xf]  ;;  %v2114_v3 = vld [vmem:[#allocation8 + $0x18] sm:$0xf0] }
 0x7b8   :  { %952 = vmatmul.bf16.vlgmr.msrb.gmra.mxu1 %v879_v4  ;;  %v2117_v4 = vor.u32 %v2380_v1, %v2114_v3 }
 0x7ba   :  { %1083 = vmatpush.bf16.msrb.mxu3 %v2141_v59 }
 0x7bb   :  { %1140 = vmatpush.bf16.xpose.msra.mxu0 %v1128_v29 }
 0x7be   :  { %1084 = vmatpush.bf16.msrb.mxu3 %v2133_v11 }
 0x7c2   :  { %1085 = vmatpush.bf16.msrb.mxu3 %v2125_v2 }
 0x7c6   :  { %1086 = vmatpush.bf16.msrb.mxu3 %v2117_v4 }
 0x7ca   :  { %1087 = vmatpush.bf16.msrb.mxu3 %v2109_v7 }
 0x7cd   :  { %1088 = vmatmul.bf16.vlgmr.msrb.gmra.mxu3 %v2899_v26 }
 0x7dd   :  { %1093 = vmatmul.bf16.gmra.mxu3 %v2902_v31 }
 0x835   :  { %v953_v32 = vpop.f32.mrf.mxu1 }
 0x836   :  { %v954_v35 = vadd.f32 %v953_v32, %v132_v33 }
 0x838   :  { %v1099_v37 = vpack.c.bf16 %v954_v35, %v954_v35 }
 0x83a   :  { %v1111_v40 = vunpack.c.l.b16 %v1099_v37 }
 0x83d   :  { %v955_v36 = vpop.f32.mrf.mxu1 }
 0x83e   :  { %v956_v38 = vadd.f32 %v955_v36, %v132_v33 }
 0x840   :  { %v1100_v39 = vpack.c.bf16 %v956_v38, %v956_v38 }
 0x842   :  { %v1112_v30 = vunpack.c.l.b16 %v1100_v39 }
 0x844   :  { %v2919_v41 = vpack.c.b16 %v1112_v30, %v1111_v40 }
 0x846   :  { %2166 = vmatmul.msk.bf16.vlgmr.msra.gmra.mxu0 %vm422_vm7, %v2919_v41 }
 0x850   :  { %v1089_v31 = vpop.f32.mrf.mxu3 }
 0x851   :  { %v1090_v33 = vadd.f32 %v1089_v31, %v978_v25 }
 0x853   :  { %v1105_v37 = vpack.c.bf16 %v1090_v33, %v1090_v33 }
 0x855   :  { %v1174_v30 = vunpack.c.l.b16 %v1105_v37 }
 0x858   :  { %v1091_v23 = vpop.f32.mrf.mxu3 }
 0x860   :  { %v1094_v29 = vpop.f32.mrf.mxu3 }
 0x861   :  { %v1095_v32 = vadd.f32 %v1094_v29, %v978_v25 }
 0x863   :  { %v1107_v35 = vpack.c.bf16 %v1095_v32, %v1095_v32 }
 0x865   :  { %v1176_v40 = vunpack.c.l.b16 %v1107_v35 }
 0x868   :  { %v1096_v36 = vpop.f32.mrf.mxu3 }
 0x869   :  { %v1097_v39 = vadd.f32 %v1096_v36, %v978_v25 }
 0x8c3   :  { %v1142_v43 = vpop.f32.mrf.mxu0 }
 0x8c4   :  { %v1143_v44 = vadd.f32 %v1142_v43, %v2923_v42 }
 0x8c6   :  { %v1147_v46 = vsel %vm422_vm7, %v1143_v44, -inf }
 0x8c7   :  { %1148 = vmax.xlane.f32.xlu2 %v1147_v46 }
 0x8cb   :  { %v1144_v53 = vpop.f32.mrf.mxu0 }
 0x8cc   :  { %v1145_v54 = vadd.f32 %v1144_v53, %v2927_v48 }
 0x8ce   :  { %v1150_v57 = vsel %vm422_vm7, %v1145_v54, -inf }
 0x8cf   :  { %1151 = vmax.xlane.f32.xlu2 %v1150_v57 }
 0x8e7   :  { %1208 = vrot.lane.b32.xlu2 %v2911_v24, %s2723_s4 }
 0x8ef   :  { %1455 = vrot.lane.b32.xlu2 %v2915_v27, %s2724_s5 }
 0x8f7   :  { %1453 = vrot.lane.b32.xlu2 %v2919_v41, %s2724_s5 }
 0x93a   :  { %v1149_v9 = vpop.xlane.xlu2 %1148 }
 0x93b   :  { %v1153_v10 = vsub.f32 %v1143_v44, %v1149_v9 }
 0x93d   :  { %v1155_v12 = vmul.f32 1.442695, %v1153_v10 }
 0x93f   :  { %2494 = vpow2.f32 %v1155_v12 }
 0x942   :  { %v1152_v13 = vpop.xlane.xlu2 %1151 }
 0x943   :  { %v1154_v14 = vsub.f32 %v1145_v54, %v1152_v13 }
 0x945   :  { %v2495_v16 = vpop.eup %2494  ;;  %v1157_v18 = vmul.f32 1.442695, %v1154_v14 }
 0x946   :  { %v1159_v28 = vsel %vm422_vm7, %v2495_v16, 0.0 }
 0x947   :  { %2496 = vpow2.f32 %v1157_v18  ;;  %1160 = vadd.xlane.f32.xlu0 %v1159_v28 }
 0x94a   :  { %v1209_v26 = vpop.permute.xlu2 %1208 }
 0x94b   :  { %v1217_v19 = vsel %vm422_vm7, %v1209_v26, 0 }
 0x94c   :  { %1225 = vmatpush.bf16.xpose.msra.mxu1 %v1217_v19 }
 0x94d   :  { %v2497_v20 = vpop.eup %2496 }
 0x94e   :  { %v1162_v22 = vsel %vm422_vm7, %v2497_v20, 0.0 }
 0x94f   :  { %1163 = vadd.xlane.f32.xlu1 %v1162_v22 }
 0x952   :  { %v1456_v57 = vpop.permute.xlu2 %1455 }
 0x953   :  { %v1463_v21 = vsel %vm422_vm7, %v1456_v57, 0 }
 0x95a   :  { %v1454_v7 = vpop.permute.xlu2 %1453 }
 0x95b   :  { %1457 = vrot.lane.b32.xlu0 %v2911_v24, %s2724_s5 }
 0x963   :  { %1346 = vrot.lane.b32.xlu0 %v2911_v24, %s2717_s25  ;;  %v1092_v24 = vadd.f32 %v1091_v23, %v978_v25 }
 0x965   :  { %v1106_v38 = vpack.c.bf16 %v1092_v24, %v1092_v24 }
 0x967   :  { %v1175_v43 = vunpack.c.l.b16 %v1106_v38 }
 0x968   :  { %1206 = vrot.lane.b32.xlu1 %v2915_v27, %s2723_s4 }
 0x969   :  { %v2957_v45 = vpack.c.b16 %v1175_v43, %v1174_v30 }
 0x96b   :  { %1344 = vrot.lane.b32.xlu0 %v2915_v27, %s2717_s25  ;;  %v1108_v27 = vpack.c.bf16 %v1097_v39, %v1097_v39 }
 0x96d   :  { %v1177_v44 = vunpack.c.l.b16 %v1108_v27 }
 0x96f   :  { %v2955_v34 = vpack.c.b16 %v1177_v44, %v1176_v40 }
 0x970   :  { %1204 = vrot.lane.b32.xlu1 %v2919_v41, %s2723_s4 }
 0x971   :  { %1191 = vmatpush.bf16.msrb.mxu0 %v2955_v34 }
 0x975   :  { %1192 = vmatpush.bf16.msrb.mxu0 %v2957_v45 }
 0x978   :  { %1342 = vrot.lane.b32.xlu1 %v2919_v41, %s2717_s25  ;;  %v2394_v41 = vld [vmem:[#allocation10 + $0x80] sm:$0xff] }
 0x979   :  { %1335 = vmatpush.bf16.msra.mxu2 %v2394_v41 }
 0x9ba   :  { %v1161_v46 = vpop.xlane.xlu0 %1160 }
 0x9bb   :  { %2498 = vrcp.f32 %v1161_v46 }
 0x9c1   :  { %v2499_v50 = vpop.eup %2498 }
 0x9c2   :  { %v1164_v47 = vpop.xlane.xlu1 %1163  ;;  %v1167_v52 = vmul.f32 %v2499_v50, %v2495_v16 }
 0x9c3   :  { %2500 = vrcp.f32 %v1164_v47 }
 0x9c9   :  { %v2501_v51 = vpop.eup %2500 }
 0x9ca   :  { %v1168_v53 = vmul.f32 %v2501_v51, %v2497_v20 }
 0x9cc   :  { %v1169_v54 = vpack.c.bf16 %v1168_v53, %v1167_v52 }
 0x9cd   :  { %v1458_v55 = vpop.permute.xlu0 %1457 }
 0x9ce   :  { %v1466_v56 = vsel %vm422_vm7, %v1458_v55, 0  ;;  %2167 = vmatmul.msk.bf16.vlgmr.msrb.gmra.mxu0 %vm422_vm7, %v1169_v54 }
 0x9cf   :  { %1474 = vmatpush.bf16.xpose.msrb.mxu2 %v1466_v56 }
 0x9d5   :  { %v1347_v58 = vpop.permute.xlu0 %1346 }
 0x9d6   :  { %v1355_v0 = vsel %vm422_vm7, %v1347_v58, 0 }
 0x9d7   :  { %1363 = vmatpush.bf16.xpose.msra.mxu3 %v1355_v0  ;;  %1475 = vmatpush.bf16.xpose.msrb.mxu2 %v1463_v21 }
 0x9da   :  { %v1207_v59 = vpop.permute.xlu1 %1206 }
 0x9db   :  { %v1214_v60 = vsel %vm422_vm7, %v1207_v59, 0 }
 0x9dc   :  { %1226 = vmatpush.bf16.xpose.msra.mxu1 %v1214_v60 }
 0x9dd   :  { %v1345_v61 = vpop.permute.xlu0 %1344 }
 0x9de   :  { %v1352_v11 = vsel %vm422_vm7, %v1345_v61, 0 }
 0x9df   :  { %1364 = vmatpush.bf16.xpose.msra.mxu3 %v1352_v11 }
 0x9e2   :  { %v1205_v62 = vpop.permute.xlu1 %1204 }
 0x9e3   :  { %2168 = vmatmul.msk.bf16.vlgmr.msra.gmra.mxu1 %vm422_vm7, %v1205_v62 }
 0x9ea   :  { %v1343_v63 = vpop.permute.xlu1 %1342 }
 0x9eb   :  { %2188 = vmatmul.msk.bf16.vlgmr.msra.gmra.mxu3 %vm422_vm7, %v1343_v63 }
 0xa4b   :  { %v1194_v2 = vpop.f32.mrf.mxu0 }
 0xa53   :  { %v1196_v1 = vpop.f32.mrf.mxu0 }
 0xa54   :  { %v1199_v3 = vpack.c.bf16 %v1196_v1, %v1194_v2 }
 0xa56   :  { %2187 = vmatmul.msk.bf16.vlgmr.msra.gmra.mxu2 %vm422_vm7, %v1199_v3 }
 0xa60   :  { %v1228_v4 = vpop.f32.mrf.mxu1 }
 0xa61   :  { %v1229_v15 = vadd.f32 %v1228_v4, %v2923_v42 }
 0xa63   :  { %v1233_v6 = vsel %vm422_vm7, %v1229_v15, -inf }
 0xa64   :  { %1234 = vmax.xlane.f32.xlu0 %v1233_v6 }
 0xa66   :  { %2199 = vmatmul.msk.bf16.vlgmr.msrb.gmra.mxu2 %vm422_vm7, %v1454_v7  ;;  %v2397_v7 = vld [vmem:[#allocation10 + $0x98] sm:$0xff] }
 0xa67   :  { %1305 = vmatpush.bf16.msrb.mxu1 %v2397_v7  ;;  %v2414_v7 = vld [vmem:[#allocation8 + $0xe4] sm:$0xf] }
 0xa68   :  { %v1230_v9 = vpop.f32.mrf.mxu1 }
 0xa69   :  { %v1231_v10 = vadd.f32 %v1230_v9, %v2927_v48 }
 0xa6b   :  { %v1236_v12 = vsel %vm422_vm7, %v1231_v10, -inf }
 0xa6c   :  { %1237 = vmax.xlane.f32.xlu2 %v1236_v12 }
 0xa6e   :  { %v1366_v13 = vpop.f32.mrf.mxu3 }
 0xa6f   :  { %v1367_v14 = vadd.f32 %v1366_v13, %v2923_v42 }
 0xa71   :  { %v1371_v16 = vsel %vm422_vm7, %v1367_v14, -inf }
 0xa74   :  { %1372 = vmax.xlane.f32.xlu2 %v1371_v16 }
 0xa76   :  { %v1368_v18 = vpop.f32.mrf.mxu3 }
 0xa77   :  { %v1369_v28 = vadd.f32 %v1368_v18, %v2927_v48 }
 0xa79   :  { %v1374_v26 = vsel %vm422_vm7, %v1369_v28, -inf }
 0xa7a   :  { %1375 = vmax.xlane.f32.xlu1 %v1374_v26 }
 0xad7   :  { %v1235_v19 = vpop.xlane.xlu0 %1234 }
 0xad8   :  { %v1239_v20 = vsub.f32 %v1229_v15, %v1235_v19 }
 0xad9   :  { %v2979_v22 = vpop.f32.mrf.mxu2 }
 0xada   :  { %v1241_v31 = vmul.f32 1.442695, %v1239_v20 }
 0xadc   :  { %2502 = vpow2.f32 %v1241_v31 }
 0xadf   :  { %v1238_v23 = vpop.xlane.xlu2 %1237 }
 0xae0   :  { %v1240_v25 = vsub.f32 %v1231_v10, %v1238_v23  ;;  %v2396_v10 = vld [vmem:[#allocation10 + $0x90] sm:$0xff] }
 0xae1   :  { %v2981_v29 = vpop.f32.mrf.mxu2  ;;  %1306 = vmatpush.bf16.msrb.mxu1 %v2396_v10  ;;  %v2262_v10 = vld [vmem:[#allocation8 + $0xe8] sm:$0xf0] }
 0xae2   :  { %v2503_v32 = vpop.eup %2502  ;;  %v1243_v33 = vmul.f32 1.442695, %v1240_v25 }
 0xae3   :  { %v1245_v24 = vsel %vm422_vm7, %v2503_v32, 0.0 }
 0xae4   :  { %2504 = vpow2.f32 %v1243_v33  ;;  %1246 = vadd.xlane.f32.xlu0 %v1245_v24 }
 0xae7   :  { %v1373_v35 = vpop.xlane.xlu2 %1372 }
 0xae8   :  { %v1377_v36 = vsub.f32 %v1367_v14, %v1373_v35 }
 0xae9   :  { %v1477_v37 = vpop.f32.mrf.mxu2 }
 0xaea   :  { %v2505_v38 = vpop.eup %2504  ;;  %v1379_v39 = vmul.f32 1.442695, %v1377_v36  ;;  %v1478_v40 = vadd.f32 %v1477_v37, %v2923_v42  ;;  %v2399_v36 = vld [vmem:[#allocation10 + $0xa8] sm:$0xff]  ;;  %v2401_v37 = vld [vmem:[#allocation10 + $0xb8] sm:$0xff] }
 0xaeb   :  { %v1248_v27 = vsel %vm422_vm7, %v2505_v38, 0.0  ;;  %1443 = vmatpush.bf16.msra.mxu1 %v2399_v36  ;;  %v2238_v36 = vld [vmem:[#allocation8 + $0xb8] sm:$0xf0] }
 0xaec   :  { %2506 = vpow2.f32 %v1379_v39  ;;  %1249 = vadd.xlane.f32.xlu2 %v1248_v27  ;;  %v1482_v30 = vsel %vm422_vm7, %v1478_v40, -inf  ;;  %v2400_v39 = vld [vmem:[#allocation10 + $0xb0] sm:$0xff] }
 0xaed   :  { %1483 = vmax.xlane.f32.xlu1 %v1482_v30  ;;  %v1376_v42 = vpop.xlane.xlu1 %1375 }
 0xaf1   :  { %v1479_v43 = vpop.f32.mrf.mxu2 }
 0xaf2   :  { %v2987_v44 = vpop.eup %2506  ;;  %v1480_v5 = vadd.f32 %v1479_v43, %v2927_v48  ;;  %v1378_v48 = vsub.f32 %v1369_v28, %v1376_v42 }
 0xaf3   :  { %v1383_v41 = vsel %vm422_vm7, %v2987_v44, 0.0 }
 0xaf4   :  { %1384 = vadd.xlane.f32.xlu2 %v1383_v41  ;;  %v1485_v46 = vsel %vm422_vm7, %v1480_v5, -inf  ;;  %v1381_v47 = vmul.f32 1.442695, %v1378_v48 }
 0xaf5   :  { %1486 = vmax.xlane.f32.xlu0 %v1485_v46 }
 0xaf6   :  { %2508 = vpow2.f32 %v1381_v47 }
 0xafc   :  { %v2509_v50 = vpop.eup %2508 }
 0xafd   :  { %v1386_v51 = vsel %vm422_vm7, %v2509_v50, 0.0 }
 0xb06   :  { %1258 = vrot.lane.b32.xlu1 %v2955_v34, %s2723_s4 }
 0xb09   :  { %1256 = vrot.lane.b32.xlu0 %v2957_v45, %s2723_s4 }
 0xb0e   :  { %1507 = vrot.lane.b32.xlu1 %v2955_v34, %s2724_s5 }
 0xb16   :  { %1505 = vrot.lane.b32.xlu1 %v2957_v45, %s2724_s5 }
 0xb1e   :  { %1394 = vrot.lane.b32.xlu1 %v2957_v45, %s2717_s25 }
 0xb33   :  { %1387 = vadd.xlane.f32.xlu0 %v1386_v51 }
 0xb57   :  { %v1247_v52 = vpop.xlane.xlu0 %1246 }
 0xb5f   :  { %v1250_v45 = vpop.xlane.xlu2 %1249 }
 0xb60   :  { %v1484_v53 = vpop.xlane.xlu1 %1483 }
 0xb61   :  { %v1488_v54 = vsub.f32 %v1478_v40, %v1484_v53 }
 0xb63   :  { %v1490_v55 = vmul.f32 1.442695, %v1488_v54 }
 0xb65   :  { %2510 = vpow2.f32 %v1490_v55 }
 0xb67   :  { %v1385_v6 = vpop.xlane.xlu2 %1384 }
 0xb68   :  { %v1487_v56 = vpop.xlane.xlu0 %1486 }
 0xb69   :  { %v1489_v57 = vsub.f32 %v1480_v5, %v1487_v56 }
 0xb6b   :  { %v2511_v58 = vpop.eup %2510  ;;  %v1492_v21 = vmul.f32 1.442695, %v1489_v57 }
 0xb6c   :  { %v1494_v0 = vsel %vm422_vm7, %v2511_v58, 0.0 }
 0xb6d   :  { %2512 = vpow2.f32 %v1492_v21  ;;  %1495 = vadd.xlane.f32.xlu2 %v1494_v0 }
 0xb6e   :  { %2514 = vrcp.f32 %v1250_v45 }
 0xb6f   :  { %2516 = vrcp.f32 %v1247_v52 }
 0xb73   :  { %v2513_v59 = vpop.eup %2512 }
 0xb74   :  { %v1497_v60 = vsel %vm422_vm7, %v2513_v59, 0.0  ;;  %v2515_v61 = vpop.eup %2514 }
 0xb75   :  { %1498 = vadd.xlane.f32.xlu2 %v1497_v60  ;;  %v2517_v62 = vpop.eup %2516  ;;  %v1254_v63 = vmul.f32 %v2515_v61, %v2505_v38  ;;  %v2398_v38 = vld [vmem:[#allocation10 + $0xa0] sm:$0xff] }
 0xb76   :  { %v1253_v1 = vmul.f32 %v2517_v62, %v2503_v32  ;;  %1444 = vmatpush.bf16.msra.mxu1 %v2398_v38  ;;  %v2268_v62 = vld [vmem:[#allocation8 + $0xf0] sm:$0xf]  ;;  %v2228_v38 = vld [vmem:[#allocation8 + $0xa0] sm:$0xf] }
 0xb78   :  { %v1259_v11 = vpop.permute.xlu1 %1258  ;;  %v1255_v3 = vpack.c.bf16 %v1254_v63, %v1253_v1  ;;  %v2417_v63 = vld [vmem:[#allocation8 + $0xf4] sm:$0xf0] }
 0xb79   :  { %1271 = vmatpush.bf16.msra.mxu0 %v1259_v11  ;;  %v2269_v1 = vor.u32 %v2417_v63, %v2268_v62  ;;  %v2423_v63 = vld [vmem:[#allocation10 + $0xe8] sm:$0xff] }
 0xb7b   :  { %v1257_v2 = vpop.permute.xlu0 %1256 }
 0xb7d   :  { %1272 = vmatpush.bf16.msra.mxu0 %v1257_v2  ;;  %v2416_v2 = vld [vmem:[#allocation8 + $0xf4] sm:$0xf] }
 0xb80   :  { %v1508_v4 = vpop.permute.xlu1 %1507  ;;  %2169 = vmatmul.msk.bf16.vlgmr.msra.gmra.mxu0 %vm422_vm7, %v1255_v3  ;;  %v2270_v3 = vld [vmem:[#allocation8 + $0xf8] sm:$0xf0] }
 0xb81   :  { %1520 = vmatpush.bf16.msrb.mxu3 %v1508_v4  ;;  %v2273_v4 = vor.u32 %v2416_v2, %v2270_v3  ;;  %v2431_v2 = vld [vmem:[#allocation10 + $0x128] sm:$0xff] }
 0xb83   :  { %1728 = vmatpush.bf16.msra.mxu2 %v2273_v4  ;;  %v2422_v4 = vld [vmem:[#allocation10 + $0xe0] sm:$0xff] }
 0xb88   :  { %v1506_v15 = vpop.permute.xlu1 %1505 }
 0xb89   :  { %1521 = vmatpush.bf16.msrb.mxu3 %v1506_v15  ;;  %v2260_v15 = vld [vmem:[#allocation8 + $0xe0] sm:$0xf] }
 0xb8d   :  { %1396 = vrot.lane.b32.xlu2 %v2955_v34, %s2717_s25 }
 0xb90   :  { %v1395_v25 = vpop.permute.xlu1 %1394 }
 0xba6   :  { %v1388_v12 = vpop.xlane.xlu0 %1387 }
 0xbe0   :  { %v1496_v9 = vpop.xlane.xlu2 %1495 }
 0xbe1   :  { %2518 = vrcp.f32 %v1496_v9 }
 0xbe2   :  { %2520 = vrcp.f32 %v1388_v12  ;;  %v2265_v12 = vor.u32 %v2414_v7, %v2262_v10 }
 0xbe4   :  { %1729 = vmatpush.bf16.msra.mxu2 %v2265_v12 }
 0xbe7   :  { %v2519_v14 = vpop.eup %2518 }
 0xbe8   :  { %v1499_v13 = vpop.xlane.xlu2 %1498  ;;  %v2521_v16 = vpop.eup %2520  ;;  %v1502_v28 = vmul.f32 %v2519_v14, %v2511_v58  ;;  %v2413_v14 = vld [vmem:[#allocation8 + $0xd4] sm:$0xf0] }
 0xbe9   :  { %2522 = vrcp.f32 %v1499_v13  ;;  %v1392_v34 = vmul.f32 %v2521_v16, %v2509_v50  ;;  %v135_v50 = vld [vmem:[#allocation11 + $0x18] ss:$0 sm:$0xff]  ;;  %v2252_v13 = vld [vmem:[#allocation8 + $0xd0] sm:$0xf]  ;;  %v2412_v16 = vld [vmem:[#allocation8 + $0xd4] sm:$0xf] }
 0xbea   :  { %2524 = vrcp.f32 %v1385_v6  ;;  %v2415_v6 = vld [vmem:[#allocation8 + $0xe4] sm:$0xf0] }
 0xbeb   :  { %v2261_v9 = vor.u32 %v2415_v6, %v2260_v15 }
 0xbef   :  { %v2523_v18 = vpop.eup %2522 }
 0xbf0   :  { %v1503_v26 = vmul.f32 %v2523_v18, %v2513_v59  ;;  %v1397_v19 = vpop.permute.xlu2 %1396  ;;  %v2525_v20 = vpop.eup %2524  ;;  %v2253_v18 = vor.u32 %v2413_v14, %v2252_v13 }
 0xbf1   :  { %1409 = vmatpush.bf16.msrb.mxu0 %v1397_v19  ;;  %v1391_v23 = vmul.f32 %v2525_v20, %v2987_v44  ;;  %v2244_v19 = vld [vmem:[#allocation8 + $0xc0] sm:$0xf]  ;;  %v2411_v20 = vld [vmem:[#allocation8 + $0xc4] sm:$0xf0] }
 0xbf2   :  { %v1504_v31 = vpack.c.bf16 %v1503_v26, %v1502_v28  ;;  %v2254_v28 = vld [vmem:[#allocation8 + $0xd8] sm:$0xf0] }
 0xbf3   :  { %v1393_v32 = vpack.c.bf16 %v1392_v34, %v1391_v23  ;;  %v2257_v26 = vor.u32 %v2412_v16, %v2254_v28  ;;  %v2410_v34 = vld [vmem:[#allocation8 + $0xc4] sm:$0xf]  ;;  %v2246_v23 = vld [vmem:[#allocation8 + $0xc8] sm:$0xf0] }
 0xbf4   :  { %2200 = vmatmul.msk.bf16.vlgmr.msrb.gmra.mxu3 %vm422_vm7, %v1504_v31  ;;  %v2245_v31 = vor.u32 %v2411_v20, %v2244_v19  ;;  %v137_v20 = vld [vmem:[#allocation11 + $0x1a] ss:$0 sm:$0xff] }
 0xbf5   :  { %1410 = vmatpush.bf16.msrb.mxu0 %v1395_v25  ;;  %1730 = vmatpush.bf16.msra.mxu2 %v2257_v26  ;;  %v2249_v25 = vor.u32 %v2410_v34, %v2246_v23 }
 0xbf8   :  { %2189 = vmatmul.msk.bf16.vlgmr.msrb.gmra.mxu0 %vm422_vm7, %v1393_v32  ;;  %v2236_v32 = vld [vmem:[#allocation8 + $0xb0] sm:$0xf] }
 0xbf9   :  { %1554 = vmatpush.bf16.msra.mxu0 %v2401_v37  ;;  %1731 = vmatpush.bf16.msra.mxu2 %v2249_v25 }
 0xbfd   :  { %v1274_v33 = vpop.f32.mrf.mxu0  ;;  %1555 = vmatpush.bf16.msra.mxu0 %v2400_v39  ;;  %v2407_v39 = vld [vmem:[#allocation8 + $0xa4] sm:$0xf0] }
 0xc05   :  { %v1276_v24 = vpop.f32.mrf.mxu0 }
 0xc06   :  { %v1279_v35 = vpack.c.bf16 %v1276_v24, %v1274_v33  ;;  %v2409_v33 = vld [vmem:[#allocation8 + $0xb4] sm:$0xf0]  ;;  %v2408_v24 = vld [vmem:[#allocation8 + $0xb4] sm:$0xf] }
 0xc07   :  { %v2241_v37 = vor.u32 %v2408_v24, %v2238_v36  ;;  %v2429_v24 = vld [vmem:[#allocation10 + $0x118] sm:$0xff]  ;;  %v2428_v36 = vld [vmem:[#allocation10 + $0x110] sm:$0xff] }
 0xc08   :  { %2178 = vmatmul.msk.bf16.vlgmr.msrb.gmra.mxu1 %vm422_vm7, %v1279_v35  ;;  %v2237_v35 = vor.u32 %v2409_v33, %v2236_v32  ;;  %v2421_v32 = vld [vmem:[#allocation10 + $0xd8] sm:$0xff]  ;;  %v2430_v33 = vld [vmem:[#allocation10 + $0x120] sm:$0xff] }
 0xc09   :  { %1714 = vmatpush.bf16.msrb.mxu1 %v2269_v1  ;;  %1732 = vmatpush.bf16.msra.mxu2 %v2241_v37  ;;  %v2427_v37 = vld [vmem:[#allocation10 + $0x108] sm:$0xff] }
 0xc0d   :  { %1715 = vmatpush.bf16.msrb.mxu1 %v2261_v9 }
 0xc11   :  { %1716 = vmatpush.bf16.msrb.mxu1 %v2253_v18  ;;  %v136_v18 = vld [vmem:[#allocation11 + $0x19] ss:$0 sm:$0xff] }
 0xc15   :  { %1717 = vmatpush.bf16.msrb.mxu1 %v2245_v31 }
 0xc19   :  { %1718 = vmatpush.bf16.msrb.mxu1 %v2237_v35  ;;  %v2419_v35 = vld [vmem:[#allocation10 + $0xc8] sm:$0xff] }
 0xc75   :  { %v1412_v40 = vpop.f32.mrf.mxu0 }
 0xc77   :  { %v1523_v27 = vpop.f32.mrf.mxu3 }
 0xc7d   :  { %v1414_v30 = vpop.f32.mrf.mxu0 }
 0xc7e   :  { %v1417_v43 = vpack.c.bf16 %v1414_v30, %v1412_v40  ;;  %v2406_v40 = vld [vmem:[#allocation8 + $0xa4] sm:$0xf]  ;;  %v2230_v30 = vld [vmem:[#allocation8 + $0xa8] sm:$0xf0] }
 0xc7f   :  { %v1525_v44 = vpop.f32.mrf.mxu3 }
 0xc80   :  { %v1528_v5 = vpack.c.bf16 %v1525_v44, %v1523_v27  ;;  %2198 = vmatmul.msk.bf16.vlgmr.msra.gmra.mxu1 %vm422_vm7, %v1417_v43  ;;  %v2229_v27 = vor.u32 %v2407_v39, %v2228_v38  ;;  %v2233_v43 = vor.u32 %v2406_v40, %v2230_v30  ;;  %v2220_v44 = vld [vmem:[#allocation8 + $0x90] sm:$0xf]  ;;  %v2426_v38 = vld [vmem:[#allocation10 + $0x100] sm:$0xff] }
 0xc81   :  { %v139_v39 = vld [vmem:[#allocation11 + $0x1b] ss:$8 sm:$0x3] }
 0xc82   :  { %2209 = vmatmul.msk.bf16.vlgmr.msra.gmra.mxu0 %vm422_vm7, %v1528_v5  ;;  %1719 = vmatpush.bf16.msrb.mxu1 %v2229_v27  ;;  %v2405_v5 = vld [vmem:[#allocation8 + $0x94] sm:$0xf0]  ;;  %v1630_v27 = vperm.slane %v139_v39, 0 }
 0xc83   :  { %1733 = vmatpush.bf16.msra.mxu2 %v2233_v43 }
 0xc85   :  { %v1308_v41 = vpop.f32.mrf.mxu1 }
 0xc86   :  { %v1338_v42 = vadd.f32 %v2979_v22, %v1308_v41  ;;  %v2404_v41 = vld [vmem:[#allocation8 + $0x94] sm:$0xf] }
 0xc8d   :  { %v1310_v46 = vpop.f32.mrf.mxu1 }
 0xc8e   :  { %v1340_v54 = vadd.f32 %v2981_v29, %v1310_v46  ;;  %v2221_v46 = vor.u32 %v2405_v5, %v2220_v44  ;;  %v1631_v5 = vperm.slane %v139_v39, 1 }
 0xc90   :  { %1720 = vmatpush.bf16.msrb.mxu1 %v2221_v46 }
 0xcfd   :  { %v1446_v48 = vpop.f32.mrf.mxu1 }
 0xcfe   :  { %v1451_v47 = vadd.f32 %v1446_v48, %v1338_v42  ;;  %v2222_v42 = vld [vmem:[#allocation8 + $0x98] sm:$0xf0] }
 0xcff   :  { %v1557_v51 = vpop.f32.mrf.mxu0  ;;  %v2225_v48 = vor.u32 %v2404_v41, %v2222_v42 }
 0xd00   :  { %v1562_v52 = vadd.f32 %v1557_v51, %v1451_v47  ;;  %v2212_v47 = vld [vmem:[#allocation8 + $0x80] sm:$0xf]  ;;  %v2402_v51 = vld [vmem:[#allocation8 + $0x84] sm:$0xf] }
 0xd01   :  { %1734 = vmatpush.bf16.msra.mxu2 %v2225_v48 }
 0xd02   :  { %v1564_v53 = vadd.f32 %v1562_v52, %v135_v50 }
 0xd04   :  { %v3018_v55 = vadd.f32 %v1564_v53, %v2884_v49 }
 0xd05   :  { %v1448_v56 = vpop.f32.mrf.mxu1 }
 0xd06   :  { %v1452_v57 = vadd.f32 %v1448_v56, %v1340_v54  ;;  %1568 = vadd.xlane.f32.xlu1 %v3018_v55  ;;  %v2214_v54 = vld [vmem:[#allocation8 + $0x88] sm:$0xf0] }
 0xd07   :  { %v1559_v58 = vpop.f32.mrf.mxu0 }
 0xd08   :  { %v1563_v21 = vadd.f32 %v1559_v58, %v1452_v57  ;;  %v2217_v57 = vor.u32 %v2402_v51, %v2214_v54 }
 0xd0a   :  { %v1565_v0 = vadd.f32 %v1563_v21, %v135_v50  ;;  %v2403_v50 = vld [vmem:[#allocation8 + $0x84] sm:$0xf0]  ;;  %1735 = vmatpush.bf16.msra.mxu2 %v2217_v57  ;;  %v2425_v21 = vld [vmem:[#allocation10 + $0xf8] sm:$0xff] }
 0xd0b   :  { %v2213_v53 = vor.u32 %v2403_v50, %v2212_v47  ;;  %1876 = vmatpush.bf16.msra.mxu3 %v2425_v21 }
 0xd0c   :  { %v3022_v22 = vadd.f32 %v1565_v0, %v2888_v17  ;;  %v2433_v0 = vld [vmem:[#allocation10 + $0x138] sm:$0xff] }
 0xd0d   :  { %1721 = vmatpush.bf16.msrb.mxu1 %v2213_v53  ;;  %1890 = vmatpush.bf16.msrb.mxu0 %v2433_v0 }
 0xd0e   :  { %1570 = vadd.xlane.f32.xlu2 %v3022_v22 }
 0xd79   :  { %v1569_v45 = vpop.xlane.xlu1 %1568 }
 0xd7a   :  { %v1572_v59 = vmul.f32 %v1569_v45, %v2796_v8 }
 0xd7c   :  { %v3027_v29 = vsub.f32 %v3018_v55, %v1572_v59 }
 0xd7e   :  { %v1576_v49 = vmul.f32 %v3027_v29, %v3027_v29 }
 0xd80   :  { %1578 = vadd.xlane.f32.xlu0 %v1576_v49  ;;  %v2424_v49 = vld [vmem:[#allocation10 + $0xf0] sm:$0xff] }
 0xd81   :  { %v1571_v60 = vpop.xlane.xlu2 %1570  ;;  %1877 = vmatpush.bf16.msra.mxu3 %v2424_v49 }
 0xd82   :  { %v1573_v61 = vmul.f32 %v1571_v60, %v2796_v8  ;;  %v2432_v60 = vld [vmem:[#allocation10 + $0x130] sm:$0xff] }
 0xd83   :  { %1891 = vmatpush.bf16.msrb.mxu0 %v2432_v60 }
 0xd84   :  { %v3033_v11 = vsub.f32 %v3022_v22, %v1573_v61 }
 0xd85   :  { %1878 = vmatpush.bf16.msra.mxu3 %v2423_v63 }
 0xd86   :  { %v1577_v17 = vmul.f32 %v3033_v11, %v3033_v11 }
 0xd87   :  { %1892 = vmatpush.bf16.msrb.mxu0 %v2431_v2 }
 0xd88   :  { %1580 = vadd.xlane.f32.xlu0 %v1577_v17 }
 0xd89   :  { %1879 = vmatpush.bf16.msra.mxu3 %v2422_v4 }
 0xd8b   :  { %1893 = vmatpush.bf16.msrb.mxu0 %v2430_v33 }
 0xd8d   :  { %1880 = vmatpush.bf16.msra.mxu3 %v2421_v32 }
 0xd8f   :  { %1894 = vmatpush.bf16.msrb.mxu0 %v2429_v24 }
 0xd93   :  { %1895 = vmatpush.bf16.msrb.mxu0 %v2428_v36 }
 0xd97   :  { %1896 = vmatpush.bf16.msrb.mxu0 %v2427_v37 }
 0xd9b   :  { %1897 = vmatpush.bf16.msrb.mxu0 %v2426_v38 }
 0xdf3   :  { %v1579_v52 = vpop.xlane.xlu0 %1578 }
 0xdf4   :  { %v1582_v56 = vmul.f32 %v1579_v52, %v2796_v8 }
 0xdf6   :  { %v1584_v58 = vadd.f32 1e-05, %v1582_v56  ;;  %v140_v56 = vld [vmem:[#allocation11 + $0x1c] ss:$0 sm:$0xff] }
 0xdf8   :  { %2526 = vrsqrt.f32 %v1584_v58  ;;  %vm1592_vm0 = vweird.f32 %v1584_v58 }
 0xdfb   :  { %v1581_v45 = vpop.xlane.xlu0 %1580 }
 0xdfc   :  { %v1583_v59 = vmul.f32 %v1581_v45, %v2796_v8 }
 0xdfe   :  { %v2527_v61 = vpop.eup %2526  ;;  %v1585_v17 = vadd.f32 1e-05, %v1583_v59 }
 0xdff   :  { %v1587_v62 = vmul.f32 %v2527_v61, %v1584_v58  ;;  %vm1593_vm15 = vweird.f32 %v2527_v61 }
 0xe00   :  { %2528 = vrsqrt.f32 %v1585_v17  ;;  %vm1594_vm1 = vmor %vm1592_vm0, %vm1593_vm15  ;;  %vm1602_vm3 = vweird.f32 %v1585_v17 }
 0xe01   :  { %v1588_v1 = vmul.f32 %v2527_v61, %v1587_v62 }
 0xe03   :  { %v1589_v3 = vmul.f32 0.5, %v1588_v1 }
 0xe05   :  { %v1590_v15 = vsub.f32 1.5, %v1589_v3 }
 0xe06   :  { %v2529_v6 = vpop.eup %2528 }
 0xe07   :  { %v1591_v8 = vmul.f32 %v2527_v61, %v1590_v15  ;;  %v1597_v7 = vmul.f32 %v2529_v6, %v1585_v17  ;;  %vm1603_vm2 = vweird.f32 %v2529_v6 }
 0xe08   :  { %vm1604_vm4 = vmor %vm1602_vm3, %vm1603_vm2 }
 0xe09   :  { %v1598_v9 = vmul.f32 %v2529_v6, %v1597_v7  ;;  %v1595_v10 = vsel %vm1594_vm1, %v2527_v61, %v1591_v8 }
 0xe0a   :  { %v1606_v14 = vmul.f32 %v1595_v10, %v3027_v29  ;;  %v2420_v29 = vld [vmem:[#allocation10 + $0xd0] sm:$0xff] }
 0xe0b   :  { %v1599_v12 = vmul.f32 0.5, %v1598_v9  ;;  %1881 = vmatpush.bf16.msra.mxu3 %v2420_v29 }
 0xe0c   :  { %v1608_v19 = vmul.f32 %v1606_v14, %v136_v18 }
 0xe0d   :  { %v1600_v13 = vsub.f32 1.5, %v1599_v12 }
 0xe0e   :  { %v1610_v31 = vadd.f32 %v1608_v19, %v137_v20 }
 0xe0f   :  { %v1601_v16 = vmul.f32 %v2529_v6, %v1600_v13  ;;  %1882 = vmatpush.bf16.msra.mxu3 %v2419_v35 }
 0xe11   :  { %v1605_v28 = vsel %vm1604_vm4, %v2529_v6, %v1601_v16 }
 0xe12   :  { %v1607_v26 = vmul.f32 %v1605_v28, %v3033_v11  ;;  %v2418_v11 = vld [vmem:[#allocation10 + $0xc0] sm:$0xff] }
 0xe13   :  { %1883 = vmatpush.bf16.msra.mxu3 %v2418_v11 }
 0xe14   :  { %v1609_v34 = vmul.f32 %v1607_v26, %v136_v18 }
 0xe16   :  { %v1611_v23 = vadd.f32 %v1609_v34, %v137_v20 }
 0xe18   :  { %v1612_v25 = vpack.c.bf16 %v1611_v23, %v1610_v31 }
 0xe1a   :  { %1722 = vmatmul.bf16.vlgmr.msrb.gmra.mxu1 %v1612_v25  ;;  %1736 = vmatmul.bf16.vlgmr.msra.gmra.mxu2 %v1612_v25 }
 0xe97   :  { %v1723_v40 = vpop.f32.mrf.mxu1 }
 0xe98   :  { %v1724_v43 = vadd.f32 %v1723_v40, %v1630_v27 }
 0xe9a   :  { %v1742_v46 = vmax.f32 %v1724_v43, 0.0 }
 0xe9d   :  { %v1737_v30 = vpop.f32.mrf.mxu2 }
 0xe9e   :  { %v1738_v48 = vadd.f32 %v1737_v30, %v1631_v5 }
 0xe9f   :  { %v1725_v44 = vpop.f32.mrf.mxu1 }
 0xea0   :  { %v1726_v41 = vadd.f32 %v1725_v44, %v1630_v27  ;;  %v1743_v52 = vmax.f32 %v1738_v48, 0.0 }
 0xea2   :  { %v1744_v42 = vmax.f32 %v1726_v41, 0.0 }
 0xea4   :  { %v1746_v47 = vpack.c.bf16 %v1744_v42, %v1742_v46 }
 0xea5   :  { %v1739_v50 = vpop.f32.mrf.mxu2 }
 0xea6   :  { %v1740_v51 = vadd.f32 %v1739_v50, %v1631_v5  ;;  %1884 = vmatmul.bf16.vlgmr.msra.gmra.mxu3 %v1746_v47 }
 0xea8   :  { %v1745_v53 = vmax.f32 %v1740_v51, 0.0 }
 0xeaa   :  { %v1747_v54 = vpack.c.bf16 %v1745_v53, %v1743_v52 }
 0xeac   :  { %1898 = vmatmul.bf16.vlgmr.msrb.gmra.mxu0 %v1747_v54 }
 0xf29   :  { %v1885_v57 = vpop.f32.mrf.mxu3  ;;  %v1899_v58 = vpop.f32.mrf.mxu0 }
 0xf2a   :  { %v1886_v21 = vadd.f32 %v1885_v57, %v140_v56 }
 0xf2c   :  { %v1900_v0 = vadd.f32 %v1899_v58, %v1886_v21 }
 0xf2e   :  { %v1904_v45 = vadd.f32 %v1900_v0, %v3018_v55 }
 0xf30   :  { %1906 = vst [vmem:[#allocation13] sm:$0xff] %v1904_v45 }
 0xf31   :  { %v1887_v59 = vpop.f32.mrf.mxu3  ;;  %v1901_v60 = vpop.f32.mrf.mxu0 }
 0xf32   :  { %v1888_v49 = vadd.f32 %v1887_v59, %v140_v56 }
 0xf34   :  { %v1902_v61 = vadd.f32 %v1901_v60, %v1888_v49 }
 0xf36   :  { %v1905_v17 = vadd.f32 %v1902_v61, %v3022_v22 }
 0xf38   :  { %1907 = vst [vmem:[#allocation13 + $0x8] sm:$0xff] %v1905_v17 }
 0xf39   :  { %1920 = dma.vmem_to_hbm [thread:$0]  %s1913_s10, 256, %s1915_s11, [#allocation4], %s2709_s29, %s2709_s29, %s2710_s30  }
 0xf3a   :  { %2706 = dma.done.wait [#allocation4], 256  }
 0xf3b   :  { %2707 = vsyncadd [#allocation4], 4294967040 }
 0xf3c   :  { %1925 = vsyncpa [#allocation3], 1 }
 0xf3d   :  { %1926 = vsyncpa [#allocation6], 1 }
 0xf3e   :  { %1927 = vsyncpa [#allocation9], 1 }
 0xf3f   :  { %1928 = vsyncpa [#allocation12], 1 }
 0xf40   :  { %1929 = vsyncpa [#allocation4], 1 }

</bundles_post_ra>
